<compile_context>
chip_gen: v7x
topology: tpu7x:2x2x1
jax: 0.10.0
libtpu: 0.0.40
codegen_flags: <defaults>
</compile_context>

<pallas_src>
import math
from functools import partial

import jax
import jax.numpy as jnp
from jax.experimental import pallas as pl
from jax.experimental.pallas import tpu as pltpu

BN_EPS = 1e-5

_TAP_MODE = None


def _tcn_tap_mode():
    """'roll' if pltpu.roll lowers for a bf16 lane rotation and matches
    jnp.roll semantics (TCN taps then ride the XLU); otherwise 'slice'
    (misaligned static slices -- correct, a bit more relayout work)."""
    global _TAP_MODE
    if _TAP_MODE is None:
        try:
            def k(x_ref, o_ref):
                o_ref[...] = pltpu.roll(x_ref[...], 32, 1)
            x = jax.lax.broadcasted_iota(jnp.bfloat16, (16, 256), 1)
            y = pl.pallas_call(
                k, out_shape=jax.ShapeDtypeStruct((16, 256), jnp.bfloat16))(x)
            ok = bool(jnp.array_equal(y, jnp.roll(x, 32, 1)))
            _TAP_MODE = "roll" if ok else "slice"
        except Exception:
            _TAP_MODE = "slice"
    return _TAP_MODE


# ------------------------------- fused kernel --------------------------------

def _unit_kernel(*refs, S, K, Vp, T, stride, has_down, res_kind, padl,
                 tap_mode):
    """Fused TCN_GCN_unit forward for one batch block (one grid step)."""
    f32, bf16 = jnp.float32, jnp.bfloat16
    L = T * Vp
    pad_f = (K - 1) // 2

    it = iter(refs)
    x_ref = next(it)                                    # (Nb, Cin, L)      bf16
    acat_ref = next(it)                                 # (128, S*128)      bf16
    wg_ref = next(it)                                   # (Cout, S*Cin)     bf16
    wd_ref = next(it) if has_down else None             # (Cout, Cin)       bf16
    wt_ref = next(it)                                   # (K, Cout, Cout)   bf16
    wr_ref = next(it) if res_kind == "conv" else None   # (Cout, Cin)       bf16
    sel_ref = next(it) if stride > 1 else None          # (stride*128, 128) bf16
    o_ref = next(it)                                    # (Nb, Cout, Lo)    bf16
    g_ref = next(it)                                    # (Cout, Lp) bf16 scratch

    nb = x_ref.shape[0]
    c_out, lp = g_ref.shape
    n_chunks = L // 128

    # Weights stay resident across the whole grid step.
    acat = acat_ref[...]
    wgc = wg_ref[...]
    wd = wd_ref[...] if has_down else None
    wr = wr_ref[...] if res_kind == "conv" else None
    sel = sel_ref[...] if stride > 1 else None

    # Zero the temporal pad regions once (128-lane aligned stores).
    g_ref[:, 0:padl] = jnp.zeros((c_out, padl), bf16)
    g_ref[:, padl + L:lp] = jnp.zeros((c_out, lp - padl - L), bf16)

    for b in range(nb):
        xb = x_ref[b]                                   # (Cin, L) bf16

        # ---- unit_gcn, per 128-lane chunk (128 // Vp frames / chunk) --------
        # y_chunk = ReLU( Wg_cat @ stack_i(x_chunk @ A_i) + down(x_chunk) )
        for j in range(n_chunks):
            xc = xb[:, j * 128:(j + 1) * 128]                       # (Cin,128)
            zc = jnp.dot(xc, acat, preferred_element_type=f32)      # (Cin,S*128)
            zs = jnp.concatenate(
                [zc[:, i * 128:(i + 1) * 128] for i in range(S)],
                axis=0).astype(bf16)                                # (S*Cin,128)
            yc = jnp.dot(wgc, zs, preferred_element_type=f32)       # (Cout,128)
            if has_down:
                yc = yc + jnp.dot(wd, xc, preferred_element_type=f32)
            else:
                yc = yc + xc.astype(f32)                            # identity down
            g_ref[:, padl + j * 128:padl + (j + 1) * 128] = (
                jnp.maximum(yc, 0.0).astype(bf16))

        # ---- unit_tcn: K frame-shifted taps over the padded bf16 slab -------
        g = g_ref[...]                                              # (Cout, Lp)
        acc = None
        for k in range(K):
            if k == pad_f:
                gk = g[:, padl:padl + L]                            # aligned
            elif tap_mode == "roll":
                shift = ((pad_f - k) * Vp) % lp
                gk = pltpu.roll(g, shift, 1)[:, padl:padl + L]      # XLU shift
            else:
                off = padl + (k - pad_f) * Vp
                gk = g[:, off:off + L]                              # fallback
            tk = jnp.dot(wt_ref[k], gk, preferred_element_type=f32)
            acc = tk if acc is None else acc + tk                   # (Cout,L) f32

        # ---- residual branch folded into the same f32 accumulator -----------
        if res_kind == "conv":
            acc = acc + jnp.dot(wr, xb, preferred_element_type=f32)
        elif res_kind == "identity":
            acc = acc + xb.astype(f32)

        # ---- temporal stride (bf16 selection matmul) + ReLU, chunk stores ---
        if stride == 1:
            o_ref[b] = jnp.maximum(acc, 0.0).astype(o_ref.dtype)
        else:
            accb = acc.astype(bf16)
            w = stride * 128
            for m in range(L // w):
                part = jnp.dot(accb[:, m * w:(m + 1) * w], sel,
                               preferred_element_type=f32)
                o_ref[b, :, m * 128:(m + 1) * 128] = (
                    jnp.maximum(part, 0.0).astype(o_ref.dtype))


# --------------------------- parameter construction ---------------------------

def build_unit_params(key, in_channels, out_channels, A, stride=1,
                      residual=True, tcn_kernel=5, gcn_bn_gamma=1e-6):
    """Mirrors PyTorch TCN_GCN_unit init; inference BN scales folded into W."""
    S, V, _ = A.shape
    Vp = 32 if V <= 32 else (64 if V <= 64 else 128)
    nrep = 128 // Vp
    bnsc = 1.0 / math.sqrt(1.0 + BN_EPS)       # BN: running mean 0, var 1, beta 0
    k = jax.random.split(key, 4)

    # adaptive PA initialised to A; forward applies L2_norm over dim=1
    An = A / (jnp.sqrt(jnp.sum(A * A, axis=1, keepdims=True)) + 1e-4)
    Apad = jnp.zeros((S, Vp, Vp), jnp.float32).at[:, :V, :V].set(An)
    eye = jnp.eye(nrep, dtype=jnp.float32)
    # per-subset 128x128 block-diagonal replication, concatenated along lanes
    Acat = jnp.concatenate([jnp.kron(eye, Apad[i]) for i in range(S)], axis=1)

    # unit_gcn branch 1x1 convs (conv_branch_init); gcn BN gamma = gcn_bn_gamma
    std_b = math.sqrt(2.0 / (out_channels * in_channels * 1 * S))
    Wg = jax.random.normal(k[0], (S, out_channels, in_channels), jnp.float32) * std_b
    Wgcat = jnp.concatenate([Wg[i] for i in range(S)], axis=1)      # (Cout, S*Cin)

    has_down = in_channels != out_channels
    Wd = None
    if has_down:   # down = 1x1 conv (kaiming fan_out) + BN(gamma=1)
        Wd = (jax.random.normal(k[1], (out_channels, in_channels), jnp.float32)
              * math.sqrt(2.0 / out_channels))

    # unit_tcn: (K,1) conv (kaiming fan_out) + BN(gamma=1)
    Wt = (jax.random.normal(k[2], (out_channels, out_channels, tcn_kernel),
                            jnp.float32)
          * math.sqrt(2.0 / (out_channels * tcn_kernel)))

    if not residual:
        res_kind, Wr = "none", None
    elif in_channels == out_channels and stride == 1:
        res_kind, Wr = "identity", None
    else:          # residual = unit_tcn(kernel_size=1, stride)
        res_kind = "conv"
        Wr = (jax.random.normal(k[3], (out_channels, in_channels), jnp.float32)
              * math.sqrt(2.0 / out_channels))

    Sel = None
    if stride > 1:  # 0/1 frame-selection matrix for the chunked temporal stride
        rows = (stride * jnp.arange(nrep)[:, None] * Vp
                + jnp.arange(Vp)[None, :]).reshape(-1)
        cols = jnp.arange(nrep * Vp)
        Sel = (jnp.zeros((stride * 128, 128), jnp.float32)
               .at[rows, cols].set(1.0).astype(jnp.bfloat16))

    # TODO(synk): trained checkpoints need a per-channel BN bias/shift path in
    # addition to the folded scale (bias is 0 only at fresh init).
    return {
        "S": S, "K": tcn_kernel, "V": V, "Vp": Vp, "stride": stride,
        "c_in": in_channels, "c_out": out_channels,
        "has_down": has_down, "res_kind": res_kind, "gcn_gamma": gcn_bn_gamma,
        # kernel operands: BN scales folded, bf16 for the MXU
        "Acat": Acat.astype(jnp.bfloat16),
        "Wgcat": (Wgcat * (gcn_bn_gamma * bnsc)).astype(jnp.bfloat16),
        "Wd": None if Wd is None else (Wd * bnsc).astype(jnp.bfloat16),
        "Wt": (jnp.transpose(Wt, (2, 0, 1)) * bnsc).astype(jnp.bfloat16),
        "Wr": None if Wr is None else (Wr * bnsc).astype(jnp.bfloat16),
        "Sel": Sel,
        # raw f32 weights kept only for the pure-JAX reference check
        "raw": {"Wg": Wg, "Wd": Wd, "Wt": Wt, "Wr": Wr, "A": An},
    }


# --------------------------------- forward ------------------------------------

def tcn_gcn_unit_forward(x, p, *, batch_block=1, keep_padded=False):
    N, Cin, T, V = x.shape
    S, K, Vp, stride = p["S"], p["K"], p["Vp"], p["stride"]
    Cout = p["c_out"]
    nrep = 128 // Vp
    pad_f = (K - 1) // 2
    assert Cin == p["c_in"] and V == p["V"]
    # TODO(synk): general T needs time-axis tiling; here T*Vp must be a
    # multiple of 128 lanes (and of stride*128 lanes when stride > 1).
    assert stride in (1, 2) and T % (nrep * stride) == 0
    T_out = (T + 2 * pad_f - K) // stride + 1
    assert T_out == T // stride
    L, Lo = T * Vp, T_out * Vp
    padl = pl.cdiv(pad_f * Vp, 128) * 128          # 128-lane aligned temporal pad
    Lp = L + 2 * padl

    Nb = batch_block
    assert N % Nb == 0, "batch_block must divide the batch size"

    # bf16 input slab, joints zero-padded to a lane-dense Vp
    xp = jnp.pad(x.astype(jnp.bfloat16),
                 ((0, 0), (0, 0), (0, 0), (0, Vp - V))).reshape(N, Cin, L)

    args = [xp, p["Acat"], p["Wgcat"]]
    in_specs = [
        pl.BlockSpec((Nb, Cin, L), lambda n: (n, 0, 0)),
        pl.BlockSpec((128, S * 128), lambda n: (0, 0)),
        pl.BlockSpec((Cout, S * Cin), lambda n: (0, 0)),
    ]
    if p["has_down"]:
        args.append(p["Wd"])
        in_specs.append(pl.BlockSpec((Cout, Cin), lambda n: (0, 0)))
    args.append(p["Wt"])
    in_specs.append(pl.BlockSpec((K, Cout, Cout), lambda n: (0, 0, 0)))
    if p["res_kind"] == "conv":
        args.append(p["Wr"])
        in_specs.append(pl.BlockSpec((Cout, Cin), lambda n: (0, 0)))
    if stride > 1:
        args.append(p["Sel"])
        in_specs.append(pl.BlockSpec((stride * 128, 128), lambda n: (0, 0)))

    kernel = partial(_unit_kernel, S=S, K=K, Vp=Vp, T=T, stride=stride,
                     has_down=p["has_down"], res_kind=p["res_kind"],
                     padl=padl, tap_mode=_tcn_tap_mode())

    # Advisory cost estimate (MXU flops + HBM bytes) for the XLA scheduler.
    flops = N * (2 * Cin * L * S * 128
                 + 2 * Cout * S * Cin * L
                 + K * 2 * Cout * Cout * L)
    if p["has_down"]:
        flops += N * 2 * Cout * Cin * L
    if p["res_kind"] == "conv":
        flops += N * 2 * Cout * Cin * L
    if stride > 1:
        flops += N * 2 * Cout * L * 128
    w_bytes = sum(int(a.size) * a.dtype.itemsize for a in args[1:])
    bytes_accessed = int(xp.size) * 2 + N * Cout * Lo * 2 + (N // Nb) * w_bytes
    cost = pl.CostEstimate(flops=int(flops), transcendentals=0,
                           bytes_accessed=int(bytes_accessed))

    # VMEM budget: double-buffered x/out blocks + resident weights + scratch.
    # (>=32 MiB to beat v5e's 16 MiB default; capped for v7x's 64 MiB VMEM.)
    need = (2 * (Nb * Cin * L + Nb * Cout * Lo) * 2 + 2 * w_bytes
            + Cout * Lp * 2)
    vmem_limit = int(min(max(32 * 2 ** 20, 4 * need), 64 * 2 ** 20))

    out = pl.pallas_call(
        kernel,
        out_shape=jax.ShapeDtypeStruct((N, Cout, Lo), jnp.bfloat16),
        grid=(N // Nb,),
        in_specs=in_specs,
        out_specs=pl.BlockSpec((Nb, Cout, Lo), lambda n: (n, 0, 0)),
        scratch_shapes=[pltpu.VMEM((Cout, Lp), jnp.bfloat16)],
        compiler_params=pltpu.CompilerParams(
            dimension_semantics=("parallel",),
            vmem_limit_bytes=vmem_limit),
        cost_estimate=cost,
    )(*args)

    out = out.reshape(N, Cout, T_out, Vp)
    # Between stacked units keep the lane-dense Vp layout (keep_padded=True);
    # slice back to V joints only at the very end of the network.
    return out if keep_padded else out[..., :V]


# ------------------------- pure-JAX f32 reference -----------------------------

def reference_forward(x, p):
    """Pure-JAX f32 reference of TCN_GCN_unit.forward (inference-mode BN)."""
    N, Cin, T, V = x.shape
    S, K, stride = p["S"], p["K"], p["stride"]
    bnsc = 1.0 / math.sqrt(1.0 + BN_EPS)
    raw = p["raw"]
    An = raw["A"]

    x2 = x.reshape(N, Cin * T, V)
    y = 0.0
    for i in range(S):
        z = jnp.matmul(x2, An[i]).reshape(N, Cin, T, V)
        y = y + jnp.einsum("oc,nctv->notv", raw["Wg"][i], z)
    y = y * (p["gcn_gamma"] * bnsc)                        # gcn BN
    if p["has_down"]:
        y = y + jnp.einsum("oc,nctv->notv", raw["Wd"], x) * bnsc
    else:
        y = y + x
    y = jnp.maximum(y, 0.0)

    pad = (K - 1) // 2
    T_out = (T + 2 * pad - K) // stride + 1
    yp = jnp.pad(y, ((0, 0), (0, 0), (pad, pad), (0, 0)))
    out = 0.0
    for k in range(K):
        xs = yp[:, :, k:k + stride * (T_out - 1) + 1:stride, :]
        out = out + jnp.einsum("oc,nctv->notv", raw["Wt"][:, :, k], xs)
    out = out * bnsc                                       # tcn BN (gamma=1)
    if p["res_kind"] == "conv":
        xs = x[:, :, ::stride, :][:, :, :T_out, :]
        out = out + jnp.einsum("oc,nctv->notv", raw["Wr"], xs) * bnsc
    elif p["res_kind"] == "identity":
        out = out + x
    return jnp.maximum(out, 0.0)


# ------------------------------------ main -------------------------------------

if __name__ == "__main__":
    root = jax.random.PRNGKey(0)
    kp1, kp2, kx1, kx2, ka = jax.random.split(root, 5)

    V, S = 25, 3
    # non-trivial adjacency so the block-diagonal x @ A_i path is really tested
    A = jax.random.uniform(ka, (S, V, V), jnp.float32)

    # --- config A: 32 -> 64 channels, stride 2 (down path, conv residual,
    # strided temporal conv), PyTorch init (gcn BN gamma = 1e-6) ---------------
    N, Cin, Cout, T = 2, 32, 64, 16
    pA = build_unit_params(kp1, Cin, Cout, A, stride=2, residual=True)
    xA = jax.random.normal(kx1, (N, Cin, T, V), jnp.float32)

    yA = jax.block_until_ready(tcn_gcn_unit_forward(xA, pA))
    assert yA.shape == (N, Cout, T // 2, V), yA.shape
    assert bool(jnp.all(jnp.isfinite(yA)))
    rA = reference_forward(xA, pA)
    assert bool(jnp.allclose(yA.astype(jnp.float32), rA, rtol=1e-1, atol=1.5e-1)), (
        float(jnp.max(jnp.abs(yA.astype(jnp.float32) - rA))))

    # batch-blocked variant (2 samples per grid step) must match too
    yA2 = jax.block_until_ready(tcn_gcn_unit_forward(xA, pA, batch_block=2))
    assert bool(jnp.allclose(yA2.astype(jnp.float32), rA, rtol=1e-1, atol=1.5e-1))

    # --- config B: 64 -> 64 channels, stride 1 (identity down + identity
    # residual) with O(1) gcn BN gamma so the graph-matmul numerics are
    # actually exercised in bf16 ----------------------------------------------
    Cin2 = Cout2 = 64
    pB = build_unit_params(kp2, Cin2, Cout2, A, stride=1, residual=True,
                           gcn_bn_gamma=1.0)
    xB = jax.random.normal(kx2, (N, Cin2, T, V), jnp.float32)
    yB = jax.block_until_ready(tcn_gcn_unit_forward(xB, pB))
    assert yB.shape == (N, Cout2, T, V), yB.shape
    rB = reference_forward(xB, pB)
    assert bool(jnp.allclose(yB.astype(jnp.float32), rB, rtol=1e-1, atol=2e-1)), (
        float(jnp.max(jnp.abs(yB.astype(jnp.float32) - rB))))

    print("KERNEL_OK")
</pallas_src>

<mosaic_0001>
module attributes {stable_mosaic.version = 11 : i64} {
  func.func @k(%arg0: memref<16x256xbf16, #tpu.memory_space<vmem>>, %arg1: memref<16x256xbf16, #tpu.memory_space<vmem>>) attributes {dimension_semantics = [], scalar_prefetch = 0 : i64, scratch_operands = 0 : i64, tpu.core_type = #tpu.core_type<tc>} {
    %c0 = arith.constant 0 : index
    %c0_0 = arith.constant 0 : index
    %0 = vector.load %arg0[%c0, %c0_0] : memref<16x256xbf16, #tpu.memory_space<vmem>>, vector<16x256xbf16>
    %c32_i32 = arith.constant 32 : i32
    %1 = tpu.dynamic_rotate %0 by %c32_i32 dim 1 : vector<16x256xbf16>, i32 -> vector<16x256xbf16>
    %c0_1 = arith.constant 0 : index
    %c0_2 = arith.constant 0 : index
    %2 = vector.load %arg1[%c0_1, %c0_2] : memref<16x256xbf16, #tpu.memory_space<vmem>>, vector<16x256xbf16>
    tpu.vector_store %arg1[%c0_1, %c0_2], %1 {strides = array<i32>} : memref<16x256xbf16, #tpu.memory_space<vmem>>, vector<16x256xbf16>,
    return
  }
}

module attributes {stable_mosaic.version = 11 : i64} {
  func.func @_unit_kernel(%arg0: i32, %arg1: memref<1x32x512xbf16, #tpu.memory_space<vmem>>, %arg2: memref<128x384xbf16, #tpu.memory_space<vmem>>, %arg3: memref<64x96xbf16, #tpu.memory_space<vmem>>, %arg4: memref<64x32xbf16, #tpu.memory_space<vmem>>, %arg5: memref<5x64x64xbf16, #tpu.memory_space<vmem>>, %arg6: memref<64x32xbf16, #tpu.memory_space<vmem>>, %arg7: memref<256x128xbf16, #tpu.memory_space<vmem>>, %arg8: memref<1x64x256xbf16, #tpu.memory_space<vmem>>, %arg9: memref<64x768xbf16, #tpu.memory_space<vmem>>) attributes {dimension_semantics = [#tpu.dimension_semantics<parallel>], iteration_bounds = array<i64: 2>, scalar_prefetch = 0 : i64, scratch_operands = 1 : i64, tpu.core_type = #tpu.core_type<tc>, window_params = [{transform_indices = @transform_0, window_bounds = array<i64: 1, 32, 512>}, {pipeline_mode = #tpu.pipeline_mode<synchronous>, transform_indices = @transform_1, window_bounds = array<i64: 128, 384>}, {pipeline_mode = #tpu.pipeline_mode<synchronous>, transform_indices = @transform_2, window_bounds = array<i64: 64, 96>}, {pipeline_mode = #tpu.pipeline_mode<synchronous>, transform_indices = @transform_3, window_bounds = array<i64: 64, 32>}, {pipeline_mode = #tpu.pipeline_mode<synchronous>, transform_indices = @transform_4, window_bounds = array<i64: 5, 64, 64>}, {pipeline_mode = #tpu.pipeline_mode<synchronous>, transform_indices = @transform_5, window_bounds = array<i64: 64, 32>}, {pipeline_mode = #tpu.pipeline_mode<synchronous>, transform_indices = @transform_6, window_bounds = array<i64: 256, 128>}, {transform_indices = @transform_7, window_bounds = array<i64: 1, 64, 256>}]} {
    %c0 = arith.constant 0 : index
    %c0_0 = arith.constant 0 : index
    %0 = vector.load %arg2[%c0, %c0_0] : memref<128x384xbf16, #tpu.memory_space<vmem>>, vector<128x384xbf16>
    %c0_1 = arith.constant 0 : index
    %c0_2 = arith.constant 0 : index
    %1 = vector.load %arg3[%c0_1, %c0_2] : memref<64x96xbf16, #tpu.memory_space<vmem>>, vector<64x96xbf16>
    %c0_3 = arith.constant 0 : index
    %c0_4 = arith.constant 0 : index
    %2 = vector.load %arg4[%c0_3, %c0_4] : memref<64x32xbf16, #tpu.memory_space<vmem>>, vector<64x32xbf16>
    %c0_5 = arith.constant 0 : index
    %c0_6 = arith.constant 0 : index
    %3 = vector.load %arg6[%c0_5, %c0_6] : memref<64x32xbf16, #tpu.memory_space<vmem>>, vector<64x32xbf16>
    %c0_7 = arith.constant 0 : index
    %c0_8 = arith.constant 0 : index
    %4 = vector.load %arg7[%c0_7, %c0_8] : memref<256x128xbf16, #tpu.memory_space<vmem>>, vector<256x128xbf16>
    %cst = arith.constant 0.000000e+00 : bf16
    %5 = vector.broadcast %cst : bf16 to vector<64x128xbf16>
    %c0_9 = arith.constant 0 : index
    %c0_10 = arith.constant 0 : index
    %6 = vector.load %arg9[%c0_9, %c0_10] : memref<64x768xbf16, #tpu.memory_space<vmem>>, vector<64x128xbf16>
    tpu.vector_store %arg9[%c0_9, %c0_10], %5 {strides = array<i32>} : memref<64x768xbf16, #tpu.memory_space<vmem>>, vector<64x128xbf16>,
    %cst_11 = arith.constant 0.000000e+00 : bf16
    %7 = vector.broadcast %cst_11 : bf16 to vector<64x128xbf16>
    %c0_12 = arith.constant 0 : index
    %c640 = arith.constant 640 : index
    %8 = vector.load %arg9[%c0_12, %c640] : memref<64x768xbf16, #tpu.memory_space<vmem>>, vector<64x128xbf16>
    tpu.vector_store %arg9[%c0_12, %c640], %7 {strides = array<i32>} : memref<64x768xbf16, #tpu.memory_space<vmem>>, vector<64x128xbf16>,
    %c0_13 = arith.constant 0 : index
    %c0_14 = arith.constant 0 : index
    %c0_15 = arith.constant 0 : index
    %9 = vector.load %arg1[%c0_13, %c0_14, %c0_15] : memref<1x32x512xbf16, #tpu.memory_space<vmem>>, vector<1x32x512xbf16>
    %10 = vector.shape_cast %9 : vector<1x32x512xbf16> to vector<32x512xbf16>
    %11 = vector.extract_strided_slice %10 {offsets = [0, 0], sizes = [32, 128], strides = [1, 1]} : vector<32x512xbf16> to vector<32x128xbf16>
    %cst_16 = arith.constant dense<0.000000e+00> : vector<32x384xf32>
    %12 = tpu.matmul %11, %0, %cst_16 {dimension_numbers = #tpu.dot_dimension_numbers<[1], [0], [0], [1], [0, 0, 1, 1], [], []>} : vector<32x128xbf16>, vector<128x384xbf16>, vector<32x384xf32> -> vector<32x384xf32>
    %13 = vector.extract_strided_slice %12 {offsets = [0, 0], sizes = [32, 128], strides = [1, 1]} : vector<32x384xf32> to vector<32x128xf32>
    %14 = vector.extract_strided_slice %12 {offsets = [0, 128], sizes = [32, 128], strides = [1, 1]} : vector<32x384xf32> to vector<32x128xf32>
    %15 = vector.extract_strided_slice %12 {offsets = [0, 256], sizes = [32, 128], strides = [1, 1]} : vector<32x384xf32> to vector<32x128xf32>
    %16 = tpu.concatenate %13, %14, %15 in 0 : vector<32x128xf32>, vector<32x128xf32>, vector<32x128xf32> -> vector<96x128xf32>
    %17 = arith.truncf %16 : vector<96x128xf32> to vector<96x128xbf16>
    %cst_17 = arith.constant dense<0.000000e+00> : vector<64x128xf32>
    %18 = tpu.matmul %1, %17, %cst_17 {dimension_numbers = #tpu.dot_dimension_numbers<[1], [0], [0], [1], [0, 0, 1, 1], [], []>} : vector<64x96xbf16>, vector<96x128xbf16>, vector<64x128xf32> -> vector<64x128xf32>
    %cst_18 = arith.constant dense<0.000000e+00> : vector<64x128xf32>
    %19 = tpu.matmul %2, %11, %cst_18 {dimension_numbers = #tpu.dot_dimension_numbers<[1], [0], [0], [1], [0, 0, 1, 1], [], []>} : vector<64x32xbf16>, vector<32x128xbf16>, vector<64x128xf32> -> vector<64x128xf32>
    %20 = arith.addf %18, %19 : vector<64x128xf32>
    %cst_19 = arith.constant 0.000000e+00 : f32
    %21 = vector.broadcast %cst_19 : f32 to vector<64x128xf32>
    %22 = arith.maximumf %20, %21 : vector<64x128xf32>
    %23 = arith.truncf %22 : vector<64x128xf32> to vector<64x128xbf16>
    %c0_20 = arith.constant 0 : index
    %c128 = arith.constant 128 : index
    %24 = vector.load %arg9[%c0_20, %c128] : memref<64x768xbf16, #tpu.memory_space<vmem>>, vector<64x128xbf16>
    tpu.vector_store %arg9[%c0_20, %c128], %23 {strides = array<i32>} : memref<64x768xbf16, #tpu.memory_space<vmem>>, vector<64x128xbf16>,
    %25 = vector.extract_strided_slice %10 {offsets = [0, 128], sizes = [32, 128], strides = [1, 1]} : vector<32x512xbf16> to vector<32x128xbf16>
    %cst_21 = arith.constant dense<0.000000e+00> : vector<32x384xf32>
    %26 = tpu.matmul %25, %0, %cst_21 {dimension_numbers = #tpu.dot_dimension_numbers<[1], [0], [0], [1], [0, 0, 1, 1], [], []>} : vector<32x128xbf16>, vector<128x384xbf16>, vector<32x384xf32> -> vector<32x384xf32>
    %27 = vector.extract_strided_slice %26 {offsets = [0, 0], sizes = [32, 128], strides = [1, 1]} : vector<32x384xf32> to vector<32x128xf32>
    %28 = vector.extract_strided_slice %26 {offsets = [0, 128], sizes = [32, 128], strides = [1, 1]} : vector<32x384xf32> to vector<32x128xf32>
    %29 = vector.extract_strided_slice %26 {offsets = [0, 256], sizes = [32, 128], strides = [1, 1]} : vector<32x384xf32> to vector<32x128xf32>
    %30 = tpu.concatenate %27, %28, %29 in 0 : vector<32x128xf32>, vector<32x128xf32>, vector<32x128xf32> -> vector<96x128xf32>
    %31 = arith.truncf %30 : vector<96x128xf32> to vector<96x128xbf16>
    %cst_22 = arith.constant dense<0.000000e+00> : vector<64x128xf32>
    %32 = tpu.matmul %1, %31, %cst_22 {dimension_numbers = #tpu.dot_dimension_numbers<[1], [0], [0], [1], [0, 0, 1, 1], [], []>} : vector<64x96xbf16>, vector<96x128xbf16>, vector<64x128xf32> -> vector<64x128xf32>
    %cst_23 = arith.constant dense<0.000000e+00> : vector<64x128xf32>
    %33 = tpu.matmul %2, %25, %cst_23 {dimension_numbers = #tpu.dot_dimension_numbers<[1], [0], [0], [1], [0, 0, 1, 1], [], []>} : vector<64x32xbf16>, vector<32x128xbf16>, vector<64x128xf32> -> vector<64x128xf32>
    %34 = arith.addf %32, %33 : vector<64x128xf32>
    %cst_24 = arith.constant 0.000000e+00 : f32
    %35 = vector.broadcast %cst_24 : f32 to vector<64x128xf32>
    %36 = arith.maximumf %34, %35 : vector<64x128xf32>
    %37 = arith.truncf %36 : vector<64x128xf32> to vector<64x128xbf16>
    %c0_25 = arith.constant 0 : index
    %c256 = arith.constant 256 : index
    %38 = vector.load %arg9[%c0_25, %c256] : memref<64x768xbf16, #tpu.memory_space<vmem>>, vector<64x128xbf16>
    tpu.vector_store %arg9[%c0_25, %c256], %37 {strides = array<i32>} : memref<64x768xbf16, #tpu.memory_space<vmem>>, vector<64x128xbf16>,
    %39 = vector.extract_strided_slice %10 {offsets = [0, 256], sizes = [32, 128], strides = [1, 1]} : vector<32x512xbf16> to vector<32x128xbf16>
    %cst_26 = arith.constant dense<0.000000e+00> : vector<32x384xf32>
    %40 = tpu.matmul %39, %0, %cst_26 {dimension_numbers = #tpu.dot_dimension_numbers<[1], [0], [0], [1], [0, 0, 1, 1], [], []>} : vector<32x128xbf16>, vector<128x384xbf16>, vector<32x384xf32> -> vector<32x384xf32>
    %41 = vector.extract_strided_slice %40 {offsets = [0, 0], sizes = [32, 128], strides = [1, 1]} : vector<32x384xf32> to vector<32x128xf32>
    %42 = vector.extract_strided_slice %40 {offsets = [0, 128], sizes = [32, 128], strides = [1, 1]} : vector<32x384xf32> to vector<32x128xf32>
    %43 = vector.extract_strided_slice %40 {offsets = [0, 256], sizes = [32, 128], strides = [1, 1]} : vector<32x384xf32> to vector<32x128xf32>
    %44 = tpu.concatenate %41, %42, %43 in 0 : vector<32x128xf32>, vector<32x128xf32>, vector<32x128xf32> -> vector<96x128xf32>
    %45 = arith.truncf %44 : vector<96x128xf32> to vector<96x128xbf16>
    %cst_27 = arith.constant dense<0.000000e+00> : vector<64x128xf32>
    %46 = tpu.matmul %1, %45, %cst_27 {dimension_numbers = #tpu.dot_dimension_numbers<[1], [0], [0], [1], [0, 0, 1, 1], [], []>} : vector<64x96xbf16>, vector<96x128xbf16>, vector<64x128xf32> -> vector<64x128xf32>
    %cst_28 = arith.constant dense<0.000000e+00> : vector<64x128xf32>
    %47 = tpu.matmul %2, %39, %cst_28 {dimension_numbers = #tpu.dot_dimension_numbers<[1], [0], [0], [1], [0, 0, 1, 1], [], []>} : vector<64x32xbf16>, vector<32x128xbf16>, vector<64x128xf32> -> vector<64x128xf32>
    %48 = arith.addf %46, %47 : vector<64x128xf32>
    %cst_29 = arith.constant 0.000000e+00 : f32
    %49 = vector.broadcast %cst_29 : f32 to vector<64x128xf32>
    %50 = arith.maximumf %48, %49 : vector<64x128xf32>
    %51 = arith.truncf %50 : vector<64x128xf32> to vector<64x128xbf16>
    %c0_30 = arith.constant 0 : index
    %c384 = arith.constant 384 : index
    %52 = vector.load %arg9[%c0_30, %c384] : memref<64x768xbf16, #tpu.memory_space<vmem>>, vector<64x128xbf16>
    tpu.vector_store %arg9[%c0_30, %c384], %51 {strides = array<i32>} : memref<64x768xbf16, #tpu.memory_space<vmem>>, vector<64x128xbf16>,
    %53 = vector.extract_strided_slice %10 {offsets = [0, 384], sizes = [32, 128], strides = [1, 1]} : vector<32x512xbf16> to vector<32x128xbf16>
    %cst_31 = arith.constant dense<0.000000e+00> : vector<32x384xf32>
    %54 = tpu.matmul %53, %0, %cst_31 {dimension_numbers = #tpu.dot_dimension_numbers<[1], [0], [0], [1], [0, 0, 1, 1], [], []>} : vector<32x128xbf16>, vector<128x384xbf16>, vector<32x384xf32> -> vector<32x384xf32>
    %55 = vector.extract_strided_slice %54 {offsets = [0, 0], sizes = [32, 128], strides = [1, 1]} : vector<32x384xf32> to vector<32x128xf32>
    %56 = vector.extract_strided_slice %54 {offsets = [0, 128], sizes = [32, 128], strides = [1, 1]} : vector<32x384xf32> to vector<32x128xf32>
    %57 = vector.extract_strided_slice %54 {offsets = [0, 256], sizes = [32, 128], strides = [1, 1]} : vector<32x384xf32> to vector<32x128xf32>
    %58 = tpu.concatenate %55, %56, %57 in 0 : vector<32x128xf32>, vector<32x128xf32>, vector<32x128xf32> -> vector<96x128xf32>
    %59 = arith.truncf %58 : vector<96x128xf32> to vector<96x128xbf16>
    %cst_32 = arith.constant dense<0.000000e+00> : vector<64x128xf32>
    %60 = tpu.matmul %1, %59, %cst_32 {dimension_numbers = #tpu.dot_dimension_numbers<[1], [0], [0], [1], [0, 0, 1, 1], [], []>} : vector<64x96xbf16>, vector<96x128xbf16>, vector<64x128xf32> -> vector<64x128xf32>
    %cst_33 = arith.constant dense<0.000000e+00> : vector<64x128xf32>
    %61 = tpu.matmul %2, %53, %cst_33 {dimension_numbers = #tpu.dot_dimension_numbers<[1], [0], [0], [1], [0, 0, 1, 1], [], []>} : vector<64x32xbf16>, vector<32x128xbf16>, vector<64x128xf32> -> vector<64x128xf32>
    %62 = arith.addf %60, %61 : vector<64x128xf32>
    %cst_34 = arith.constant 0.000000e+00 : f32
    %63 = vector.broadcast %cst_34 : f32 to vector<64x128xf32>
    %64 = arith.maximumf %62, %63 : vector<64x128xf32>
    %65 = arith.truncf %64 : vector<64x128xf32> to vector<64x128xbf16>
    %c0_35 = arith.constant 0 : index
    %c512 = arith.constant 512 : index
    %66 = vector.load %arg9[%c0_35, %c512] : memref<64x768xbf16, #tpu.memory_space<vmem>>, vector<64x128xbf16>
    tpu.vector_store %arg9[%c0_35, %c512], %65 {strides = array<i32>} : memref<64x768xbf16, #tpu.memory_space<vmem>>, vector<64x128xbf16>,
    %c0_36 = arith.constant 0 : index
    %c0_37 = arith.constant 0 : index
    %67 = vector.load %arg9[%c0_36, %c0_37] : memref<64x768xbf16, #tpu.memory_space<vmem>>, vector<64x768xbf16>
    %68 = vector.extract_strided_slice %67 {offsets = [0, 64], sizes = [64, 512], strides = [1, 1]} : vector<64x768xbf16> to vector<64x512xbf16>
    %c0_38 = arith.constant 0 : index
    %c0_39 = arith.constant 0 : index
    %c0_40 = arith.constant 0 : index
    %69 = vector.load %arg5[%c0_38, %c0_39, %c0_40] : memref<5x64x64xbf16, #tpu.memory_space<vmem>>, vector<1x64x64xbf16>
    %70 = vector.shape_cast %69 : vector<1x64x64xbf16> to vector<64x64xbf16>
    %cst_41 = arith.constant dense<0.000000e+00> : vector<64x512xf32>
    %71 = tpu.matmul %70, %68, %cst_41 {dimension_numbers = #tpu.dot_dimension_numbers<[1], [0], [0], [1], [0, 0, 1, 1], [], []>} : vector<64x64xbf16>, vector<64x512xbf16>, vector<64x512xf32> -> vector<64x512xf32>
    %72 = vector.extract_strided_slice %67 {offsets = [0, 96], sizes = [64, 512], strides = [1, 1]} : vector<64x768xbf16> to vector<64x512xbf16>
    %c1 = arith.constant 1 : index
    %c0_42 = arith.constant 0 : index
    %c0_43 = arith.constant 0 : index
    %73 = vector.load %arg5[%c1, %c0_42, %c0_43] : memref<5x64x64xbf16, #tpu.memory_space<vmem>>, vector<1x64x64xbf16>
    %74 = vector.shape_cast %73 : vector<1x64x64xbf16> to vector<64x64xbf16>
    %cst_44 = arith.constant dense<0.000000e+00> : vector<64x512xf32>
    %75 = tpu.matmul %74, %72, %cst_44 {dimension_numbers = #tpu.dot_dimension_numbers<[1], [0], [0], [1], [0, 0, 1, 1], [], []>} : vector<64x64xbf16>, vector<64x512xbf16>, vector<64x512xf32> -> vector<64x512xf32>
    %76 = arith.addf %71, %75 : vector<64x512xf32>
    %77 = vector.extract_strided_slice %67 {offsets = [0, 128], sizes = [64, 512], strides = [1, 1]} : vector<64x768xbf16> to vector<64x512xbf16>
    %c2 = arith.constant 2 : index
    %c0_45 = arith.constant 0 : index
    %c0_46 = arith.constant 0 : index
    %78 = vector.load %arg5[%c2, %c0_45, %c0_46] : memref<5x64x64xbf16, #tpu.memory_space<vmem>>, vector<1x64x64xbf16>
    %79 = vector.shape_cast %78 : vector<1x64x64xbf16> to vector<64x64xbf16>
    %cst_47 = arith.constant dense<0.000000e+00> : vector<64x512xf32>
    %80 = tpu.matmul %79, %77, %cst_47 {dimension_numbers = #tpu.dot_dimension_numbers<[1], [0], [0], [1], [0, 0, 1, 1], [], []>} : vector<64x64xbf16>, vector<64x512xbf16>, vector<64x512xf32> -> vector<64x512xf32>
    %81 = arith.addf %76, %80 : vector<64x512xf32>
    %82 = vector.extract_strided_slice %67 {offsets = [0, 160], sizes = [64, 512], strides = [1, 1]} : vector<64x768xbf16> to vector<64x512xbf16>
    %c3 = arith.constant 3 : index
    %c0_48 = arith.constant 0 : index
    %c0_49 = arith.constant 0 : index
    %83 = vector.load %arg5[%c3, %c0_48, %c0_49] : memref<5x64x64xbf16, #tpu.memory_space<vmem>>, vector<1x64x64xbf16>
    %84 = vector.shape_cast %83 : vector<1x64x64xbf16> to vector<64x64xbf16>
    %cst_50 = arith.constant dense<0.000000e+00> : vector<64x512xf32>
    %85 = tpu.matmul %84, %82, %cst_50 {dimension_numbers = #tpu.dot_dimension_numbers<[1], [0], [0], [1], [0, 0, 1, 1], [], []>} : vector<64x64xbf16>, vector<64x512xbf16>, vector<64x512xf32> -> vector<64x512xf32>
    %86 = arith.addf %81, %85 : vector<64x512xf32>
    %87 = vector.extract_strided_slice %67 {offsets = [0, 192], sizes = [64, 512], strides = [1, 1]} : vector<64x768xbf16> to vector<64x512xbf16>
    %c4 = arith.constant 4 : index
    %c0_51 = arith.constant 0 : index
    %c0_52 = arith.constant 0 : index
    %88 = vector.load %arg5[%c4, %c0_51, %c0_52] : memref<5x64x64xbf16, #tpu.memory_space<vmem>>, vector<1x64x64xbf16>
    %89 = vector.shape_cast %88 : vector<1x64x64xbf16> to vector<64x64xbf16>
    %cst_53 = arith.constant dense<0.000000e+00> : vector<64x512xf32>
    %90 = tpu.matmul %89, %87, %cst_53 {dimension_numbers = #tpu.dot_dimension_numbers<[1], [0], [0], [1], [0, 0, 1, 1], [], []>} : vector<64x64xbf16>, vector<64x512xbf16>, vector<64x512xf32> -> vector<64x512xf32>
    %91 = arith.addf %86, %90 : vector<64x512xf32>
    %cst_54 = arith.constant dense<0.000000e+00> : vector<64x512xf32>
    %92 = tpu.matmul %3, %10, %cst_54 {dimension_numbers = #tpu.dot_dimension_numbers<[1], [0], [0], [1], [0, 0, 1, 1], [], []>} : vector<64x32xbf16>, vector<32x512xbf16>, vector<64x512xf32> -> vector<64x512xf32>
    %93 = arith.addf %91, %92 : vector<64x512xf32>
    %94 = arith.truncf %93 : vector<64x512xf32> to vector<64x512xbf16>
    %95 = vector.extract_strided_slice %94 {offsets = [0, 0], sizes = [64, 256], strides = [1, 1]} : vector<64x512xbf16> to vector<64x256xbf16>
    %cst_55 = arith.constant dense<0.000000e+00> : vector<64x128xf32>
    %96 = tpu.matmul %95, %4, %cst_55 {dimension_numbers = #tpu.dot_dimension_numbers<[1], [0], [0], [1], [0, 0, 1, 1], [], []>} : vector<64x256xbf16>, vector<256x128xbf16>, vector<64x128xf32> -> vector<64x128xf32>
    %cst_56 = arith.constant 0.000000e+00 : f32
    %97 = vector.broadcast %cst_56 : f32 to vector<64x128xf32>
    %98 = arith.maximumf %96, %97 : vector<64x128xf32>
    %99 = arith.truncf %98 : vector<64x128xf32> to vector<64x128xbf16>
    %c0_57 = arith.constant 0 : index
    %c0_58 = arith.constant 0 : index
    %c0_59 = arith.constant 0 : index
    %100 = vector.load %arg8[%c0_57, %c0_58, %c0_59] : memref<1x64x256xbf16, #tpu.memory_space<vmem>>, vector<1x64x128xbf16>
    %101 = vector.shape_cast %100 : vector<1x64x128xbf16> to vector<64x128xbf16>
    %102 = vector.shape_cast %99 : vector<64x128xbf16> to vector<1x64x128xbf16>
    tpu.vector_store %arg8[%c0_57, %c0_58, %c0_59], %102 {strides = array<i32>} : memref<1x64x256xbf16, #tpu.memory_space<vmem>>, vector<1x64x128xbf16>,
    %103 = vector.extract_strided_slice %94 {offsets = [0, 256], sizes = [64, 256], strides = [1, 1]} : vector<64x512xbf16> to vector<64x256xbf16>
    %cst_60 = arith.constant dense<0.000000e+00> : vector<64x128xf32>
    %104 = tpu.matmul %103, %4, %cst_60 {dimension_numbers = #tpu.dot_dimension_numbers<[1], [0], [0], [1], [0, 0, 1, 1], [], []>} : vector<64x256xbf16>, vector<256x128xbf16>, vector<64x128xf32> -> vector<64x128xf32>
    %cst_61 = arith.constant 0.000000e+00 : f32
    %105 = vector.broadcast %cst_61 : f32 to vector<64x128xf32>
    %106 = arith.maximumf %104, %105 : vector<64x128xf32>
    %107 = arith.truncf %106 : vector<64x128xf32> to vector<64x128xbf16>
    %c0_62 = arith.constant 0 : index
    %c0_63 = arith.constant 0 : index
    %c128_64 = arith.constant 128 : index
    %108 = vector.load %arg8[%c0_62, %c0_63, %c128_64] : memref<1x64x256xbf16, #tpu.memory_space<vmem>>, vector<1x64x128xbf16>
    %109 = vector.shape_cast %108 : vector<1x64x128xbf16> to vector<64x128xbf16>
    %110 = vector.shape_cast %107 : vector<64x128xbf16> to vector<1x64x128xbf16>
    tpu.vector_store %arg8[%c0_62, %c0_63, %c128_64], %110 {strides = array<i32>} : memref<1x64x256xbf16, #tpu.memory_space<vmem>>, vector<1x64x128xbf16>,
    return
  }
  func.func @transform_0(%arg0: i32) -> (i32, i32, i32) {
    %c0_i32 = arith.constant 0 : i32
    %c0_i32_0 = arith.constant 0 : i32
    %c0_i32_1 = arith.constant 0 : i32
    return %arg0, %c0_i32, %c0_i32_0 : i32, i32, i32
  }
  func.func @transform_1(%arg0: i32) -> (i32, i32) {
    %c0_i32 = arith.constant 0 : i32
    %c0_i32_0 = arith.constant 0 : i32
    %c0_i32_1 = arith.constant 0 : i32
    return %c0_i32, %c0_i32_0 : i32, i32
  }
  func.func @transform_2(%arg0: i32) -> (i32, i32) {
    %c0_i32 = arith.constant 0 : i32
    %c0_i32_0 = arith.constant 0 : i32
    %c0_i32_1 = arith.constant 0 : i32
    return %c0_i32, %c0_i32_0 : i32, i32
  }
  func.func @transform_3(%arg0: i32) -> (i32, i32) {
    %c0_i32 = arith.constant 0 : i32
    %c0_i32_0 = arith.constant 0 : i32
    %c0_i32_1 = arith.constant 0 : i32
    return %c0_i32, %c0_i32_0 : i32, i32
  }
  func.func @transform_4(%arg0: i32) -> (i32, i32, i32) {
    %c0_i32 = arith.constant 0 : i32
    %c0_i32_0 = arith.constant 0 : i32
    %c0_i32_1 = arith.constant 0 : i32
    %c0_i32_2 = arith.constant 0 : i32
    return %c0_i32, %c0_i32_0, %c0_i32_1 : i32, i32, i32
  }
  func.func @transform_5(%arg0: i32) -> (i32, i32) {
    %c0_i32 = arith.constant 0 : i32
    %c0_i32_0 = arith.constant 0 : i32
    %c0_i32_1 = arith.constant 0 : i32
    return %c0_i32, %c0_i32_0 : i32, i32
  }
  func.func @transform_6(%arg0: i32) -> (i32, i32) {
    %c0_i32 = arith.constant 0 : i32
    %c0_i32_0 = arith.constant 0 : i32
    %c0_i32_1 = arith.constant 0 : i32
    return %c0_i32, %c0_i32_0 : i32, i32
  }
  func.func @transform_7(%arg0: i32) -> (i32, i32, i32) {
    %c0_i32 = arith.constant 0 : i32
    %c0_i32_0 = arith.constant 0 : i32
    %c0_i32_1 = arith.constant 0 : i32
    return %arg0, %c0_i32, %c0_i32_0 : i32, i32, i32
  }
}

</mosaic_0001>

<bundles_post_ra>
// kernel: tpu_custom_call.1
= control target key start
LH: loop header
LB: loop body
LE: loop exit
PB: predicated region body
PF: predicated region fallthrough
CT: control target
= control target key end

     0   :  { %s5944_s0 = inlined_call_operand.hbm [shape: bf16[2,32,512], index: 0, kind: input, shape index: {}]   ;;  %s5945_s1 = inlined_call_operand.hbm [shape: bf16[128,384], index: 1, kind: input, shape index: {}]   ;;  %s5946_s2 = inlined_call_operand.vmem [shape: bf16[64,96], index: 2, kind: input, shape index: {}]   ;;  %s5947_s3 = inlined_call_operand.vmem [shape: bf16[64,32], index: 3, kind: input, shape index: {}]   ;;  %s5948_s4 = inlined_call_operand.hbm [shape: bf16[5,64,64], index: 4, kind: input, shape index: {}]   ;;  %s5949_s5 = inlined_call_operand.vmem [shape: bf16[64,32], index: 5, kind: input, shape index: {}]   ;;  %s5950_s6 = inlined_call_operand.hbm [shape: bf16[256,128], index: 6, kind: input, shape index: {}]   ;;  %s5951_s7 = inlined_call_operand.hbm [shape: bf16[2,64,256], index: 7, kind: output, shape index: {}]  }
   0x1   :  { %5956 = sst [smem:[#allocation17_spill]] %s5945_s1 }
   0x2   :  { %12 = vsyncpa [#allocation4], 0 }
   0x3   :  { %14 = vsyncpa [#allocation4 + $0x1], 0 }
   0x4   :  { %15 = vsyncpa [#allocation7], 0 }
   0x5   :  { %16 = vsyncpa [#allocation10], 0 }
   0x6   :  { %17 = vsyncpa [#allocation5], 0 }
   0x7   :  { %19 = vsyncpa [#allocation5 + $0x1], 0  ;;  %s4926_s24 = smov 0   ;;  %s4928_s25 = smov 0  }
   0x8   :  { %s4930_s26 = smov 0   ;;  %s4932_s27 = smov 0  }
   0x9 LB: > { %s4947_s28 = sadd.s32 4294967295, %s4867_s27   ;;  %s3674_s29 = sadd.s32 4294967294, %s4867_s27   ;;  %s4867_s27 = sphi %s4932_s27, %s5979_s27   ;;  %s4863_s26 = sphi %s4930_s26, %s5978_s26   ;;  %s4859_s25 = sphi %s4928_s25, %s5977_s25   ;;  %s4855_s24 = sphi %s4926_s24, %s5976_s24  }
   0xa   : > { %p45_p0 = scmp.ne.s32.totalorder %s4859_s25, %s4855_s24  ;;  %p5952_p1 = scmp.eq.s32.totalorder %s4947_s28, 0 }
   0xb   : > { %p201_p3 = scmp.eq.s32.totalorder %s3674_s29, 1  ;;  %p3675_p5 = scmp.ge.s32.totalorder %s4867_s27, 1 }
   0xc   : > { %p4956_p4 = por %p5952_p1, %p45_p0  ;;  %p208_p7 = scmp.lt.s32.totalorder %s4867_s27, 3 }
   0xd   : > { %p4961_p6 = por %p201_p3, %p45_p0  ;;  %s4869_s10 = smov [#allocation6]  }
   0xe   : > { %s5957_s30 = scalar_select %p4956_p4, 1, 0 }
   0xf   : > { %s5958_s8 = scalar_select %p4961_p6, 1, 0 }
  0x10   : > { %p4966_p8 = pnand %p3675_p5, %p208_p7  ;;  %s220_s11 = sshll.u32 %s4869_s10, 4  ;;  %s4970_s11 = int_to_ptr.vmem [resolvable:$true] %s220_s11 }
  0x11   : > { %5959 = sst [smem:[#allocation16_spill]] %s5958_s8  ;;  %s4870_s13 = smov [#allocation8]  }
  0x12   : > { %s5960_s9 = scalar_select %p4966_p8, 1, 0 }
  0x13   : > { %p4488_p9 = pneg %p4966_p8  ;;  %s239_s14 = sshll.u32 %s4870_s13, 4  ;;  %s4981_s14 = int_to_ptr.vmem [resolvable:$true] %s239_s14 }
  0x14   : > { %s5962_s1 = sld [smem:[#allocation17_spill]] }
  0x15   : > { %p4977_p11 = pnand %p4488_p9, %p5952_p1 }
  0x17   : > { %p4991_p13 = pneg %p4977_p11 }
  0x1a   : > { %s4679_s17 = scalar_lea.hbm %s5962_s1, 3072 }
  0x1b   : > { %p4680_p12 = scmp.ne.s32.totalorder %s5962_s1, %s4679_s17  ;;  %p4686_p5 = scmp.lt.u32.totalorder %s4679_s17, %s5962_s1 }
  0x1d   : > { %p4682_p0 = pnand %p4991_p13, %p4680_p12 }
  0x1f   : > { %p4683_p3 = pneg %p4682_p0 }
  0x21   : > { %p4688_p7 = pnand %p4686_p5, %p4683_p3 }
  0x23   : > { %4691 = shalt.err (!%p4688_p7)
}
  0x24   : > { %s4692_s23 = scalar_lea.vmem %s4970_s11, 3072  ;;  %p4700_p2 = scmp.lt.s32.totalorder %s4970_s11, %s4970_s11 }
  0x25   : > { %p4693_p9 = scmp.ne.s32.totalorder %s4970_s11, %s4692_s23  ;;  %p4701_p6 = scmp.lt.s32.totalorder %s4692_s23, %s4692_s23 }
  0x27   : > { %p4695_p10 = pnand %p4693_p9, %p4991_p13  ;;  %p4702_p12 = por %p4701_p6, %p4700_p2 }
  0x29   : > { %p4696_p1 = pneg %p4695_p10 }
  0x2b   : > { %p4703_p0 = pnand %p4702_p12, %p4696_p1 }
  0x2d   : > { %4706 = shalt.err (!%p4703_p0)
}
  0x2e   : > { %s4871_s29 = smov 192   ;;  %s4872_s10 = smov 12  }
  0x2f   : > { %4491 = dma.hbm_to_vmem [thread:$0]  (!%p4977_p11), %s5962_s1, 3072, %s4970_s11, [#allocation7], %s4871_s29, %s4871_s29, %s4872_s10  }
  0x30   : > { %s4707_s18 = scalar_lea.hbm %s5948_s4, 2560 }
  0x31   : > { %p4708_p2 = scmp.ne.s32.totalorder %s5948_s4, %s4707_s18  ;;  %p4714_p10 = scmp.lt.u32.totalorder %s4707_s18, %s5948_s4 }
  0x33   : > { %p4710_p1 = pnand %p4708_p2, %p4991_p13 }
  0x35   : > { %p4711_p6 = pneg %p4710_p1 }
  0x37   : > { %p4716_p3 = pnand %p4714_p10, %p4711_p6 }
  0x39   : > { %4719 = shalt.err (!%p4716_p3)
}
  0x3a   : > { %s4720_s11 = scalar_lea.vmem %s4981_s14, 2560  ;;  %p4728_p12 = scmp.lt.s32.totalorder %s4981_s14, %s4981_s14 }
  0x3b   : > { %p4721_p5 = scmp.ne.s32.totalorder %s4981_s14, %s4720_s11  ;;  %p4729_p0 = scmp.lt.s32.totalorder %s4720_s11, %s4720_s11 }
  0x3d   : > { %p4723_p7 = pnand %p4721_p5, %p4991_p13  ;;  %p4730_p2 = por %p4729_p0, %p4728_p12 }
  0x3f   : > { %p4724_p9 = pneg %p4723_p7 }
  0x41   : > { %p4731_p1 = pnand %p4730_p2, %p4724_p9 }
  0x43   : > { %4734 = shalt.err (!%p4731_p1)
}
  0x44   : > { %s4873_s29 = smov 64   ;;  %s4874_s10 = smov 4  }
  0x45   : > { %4494 = dma.hbm_to_vmem [thread:$0]  (!%p4977_p11), %s5948_s4, 2560, %s4981_s14, [#allocation7], %s4873_s29, %s4873_s29, %s4874_s10  }
  0x46   : > { %s4875_s16 = smov [#allocation9]   ;;  %s5036_s18 = sadd.s32 1, %s4867_s27  }
  0x47   : > { %s255_s17 = sshll.u32 %s4875_s16, 4  ;;  %s4735_s22 = scalar_lea.hbm %s5950_s6, 2048  ;;  %s256_s17 = int_to_ptr.vmem [resolvable:$true] %s255_s17 }
  0x48   : > { %p4736_p6 = scmp.ne.s32.totalorder %s5950_s6, %s4735_s22  ;;  %p4742_p5 = scmp.lt.u32.totalorder %s4735_s22, %s5950_s6 }
  0x4a   : > { %p4738_p10 = pnand %p4736_p6, %p4991_p13 }
  0x4c   : > { %p4739_p3 = pneg %p4738_p10 }
  0x4e   : > { %p4744_p7 = pnand %p4742_p5, %p4739_p3 }
  0x50   : > { %4747 = shalt.err (!%p4744_p7)
}
  0x51   : > { %s4748_s14 = scalar_lea.vmem %s256_s17, 2048  ;;  %p4756_p2 = scmp.lt.s32.totalorder %s256_s17, %s256_s17 }
  0x52   : > { %p4749_p9 = scmp.ne.s32.totalorder %s256_s17, %s4748_s14  ;;  %p4757_p1 = scmp.lt.s32.totalorder %s4748_s14, %s4748_s14 }
  0x54   : > { %p4751_p12 = pnand %p4749_p9, %p4991_p13  ;;  %p4758_p4 = por %p4757_p1, %p4756_p2 }
  0x56   : > { %p4752_p0 = pneg %p4751_p12 }
  0x58   : > { %p4759_p8 = pnand %p4758_p4, %p4752_p0 }
  0x5a   : > { %4762 = shalt.err (!%p4759_p8)
}
  0x5b   : > { %4497 = dma.hbm_to_vmem [thread:$0]  (!%p4977_p11), %s5950_s6, 2048, %s256_s17, [#allocation10], %s4873_s29, %s4873_s29, %s4874_s10  }
  0x5c   : > { %s29_s1 = ssub.s32 %s4867_s27, %s5036_s18  ;;  %s32_s8 = sadd.s32 1, %s4863_s26 }
  0x5d   : > { %p30_p4 = scmp.eq.s32.totalorder %s29_s1, 0  ;;  %p39_p8 = scmp.ne.s32.totalorder %s4863_s26, %s4859_s25 }
  0x5e   : > { %p40_p13 = scmp.eq.s32.totalorder %s4867_s27, 0  ;;  %p4509_p6 = scmp.lt.s32.totalorder %s4867_s27, 2 }
  0x5f   : > { %s5064_s12 = scalar_select %p30_p4, %s4863_s26, %s32_s8  }
  0x60   : > { %p41_p10 = por %p40_p13, %p39_p8  ;;  %p5964_p3 = scmp.eq.s32.totalorder %s4947_s28, 1 }
  0x61   : > { %s269_s16 = sand.u32 1, %s4863_s26   ;;  %s3870_s19 = sshll.u32 %s4867_s27, 10 }
  0x62   : > { %p5068_p5 = por %p5964_p3, %p39_p8  ;;  %s3680_s21 = sshll.u32 %s269_s16, 6 }
  0x63   : > { %s5077_s29 = scalar_lea.hbm %s5944_s0, %s3870_s19  ;;  %s273_s10 = scalar_lea.vmem [#allocation3], %s3680_s21 }
  0x64   : > { %s280_s17 = sshll.u32 %s273_s10, 4  ;;  %p5079_p11 = pnand %p4509_p6, %p41_p10  ;;  %s5083_s17 = int_to_ptr.vmem [resolvable:$true] %s280_s17 }
  0x65   : > { %s5085_s14 = scalar_lea.sflag [#allocation4], %s269_s16  ;;  %s4763_s13 = scalar_lea.hbm %s5077_s29, 1024 }
  0x66   : > { %p4764_p7 = scmp.ne.s32.totalorder %s5077_s29, %s4763_s13  ;;  %p4765_p9 = pneg %p5079_p11 }
  0x67   : > { %s4768_s8 = scalar_lea.hbm %s5944_s0, 2048  ;;  %p4769_p2 = scmp.lt.u32.totalorder %s5077_s29, %s5944_s0 }
  0x68   : > { %p4766_p12 = pnand %p4765_p9, %p4764_p7  ;;  %p4770_p1 = scmp.lt.u32.totalorder %s4768_s8, %s4763_s13 }
  0x69   : > { %p4772_p8 = scmp.lt.u32.totalorder %s4763_s13, %s5077_s29 }
  0x6a   : > { %p4767_p0 = pneg %p4766_p12  ;;  %p4771_p4 = por %p4770_p1, %p4769_p2 }
  0x6c   : > { %p4773_p13 = por %p4772_p8, %p4771_p4 }
  0x6e   : > { %p4774_p6 = pnand %p4773_p13, %p4767_p0 }
  0x70   : > { %4777 = shalt.err (!%p4774_p6)
}
  0x71   : > { %s4778_s16 = scalar_lea.vmem %s5083_s17, 1024  ;;  %s4876_s22 = smov [#allocation3]  }
  0x72   : > { %p4779_p10 = scmp.ne.s32.totalorder %s5083_s17, %s4778_s16  ;;  %s4783_s23 = sshll.u32 %s4876_s22, 4  ;;  %s4784_s23 = int_to_ptr.vmem [resolvable:$false] %s4783_s23 }
  0x73   : > { %s4785_s10 = scalar_lea.vmem %s4784_s23, 2048  ;;  %p4786_p12 = scmp.lt.s32.totalorder %s5083_s17, %s4784_s23 }
  0x74   : > { %p4781_p3 = pnand %p4779_p10, %p4765_p9  ;;  %p4787_p2 = scmp.lt.s32.totalorder %s4785_s10, %s4778_s16 }
  0x76   : > { %p4782_p7 = pneg %p4781_p3  ;;  %p4788_p1 = por %p4787_p2, %p4786_p12 }
  0x78   : > { %p4789_p4 = pnand %p4788_p1, %p4782_p7 }
  0x7a   : > { %4792 = shalt.err (!%p4789_p4)
}
  0x7b   : > { %s4877_s13 = smov 256   ;;  %s4878_s15 = smov 16  }
  0x7c   : > { %4501 = dma.hbm_to_vmem [thread:$0]  (!%p5079_p11), %s5077_s29, 1024, %s5083_s17, %s5085_s14, %s4877_s13, %s4877_s13, %s4878_s15  }
  0x7d   : > { %p5967_p9 = scmp.ne.s32.totalorder %s5960_s9, 0 }
  0x7e   : > { %s5116_s1 = sand.u32 (!%p5967_p9), 1, %s4859_s25   ;;  %p5968_p0 = scmp.ne.s32.totalorder (!%p5967_p9), %s5957_s30, 0 }
  0x7f   : > { %292 = sbr.rel (%p5967_p9) target bundleno = 1970 (0x7b2), region = 48  ;;  %s3684_s8 = sshll.u32 (!%p5967_p9), %s5116_s1, 6 }
  0x80   : > { %s295_s19 = scalar_lea.sflag (!%p5967_p9), [#allocation4], %s5116_s1  ;;  %s5122_s21 = scalar_lea.vmem (!%p5967_p9), [#allocation3], %s3684_s8 }
  0x86   : > { %4838 = dma.done.wait (%p5968_p0), %s295_s19, 1024  }
  0x87   : > { %4840 = vsyncadd (%p5968_p0), %s295_s19, 4294966272  ;;  %p5969_p11 = scmp.eq.s32.totalorder %s4947_s28, 0 }
  0x89   : > { %4842 = dma.done.wait (%p5969_p11), [#allocation7], 5632   ;;  %p5970_p8 = pmov %p5969_p11 }
  0x8b   : > { %4844 = vsyncadd (%p5970_p8), [#allocation7], 4294961664  ;;  %p5971_p13 = pmov %p5970_p8 }
  0x8c   : > { %p5972_p6 = pmov %p5970_p8 }
  0x8d   : > { %4846 = dma.done.wait (%p5971_p13), [#allocation10], 2048  }
  0x8e   : > { %4848 = vsyncadd (%p5972_p6), [#allocation10], 4294965248  ;;  %v4879_v0 = vmov 0   ;;  %v5137_v1 = vld [vmem:[#allocation6 + $0x4] ss:$12 sps:$4 sm:$0xff]   ;;  %vm714_vm0 = vcmask 261120  }
  0x8f   : > { %618 = vmatprep.mubr.bf16.mxu0 %v4879_v0  ;;  %v5139_v2 = vld [vmem:[#allocation6] ss:$12 sps:$4 sm:$0xff]   ;;  %586 = vmatprep.subr.bf16.mxu0 %v5137_v1  ;;  %v5142_v3 = vld [vmem:[#allocation6 + $0x1c] ss:$12 sps:$4 sm:$0xff]   ;;  %v5145_v4 = vld [vmem:[#allocation6 + $0x18] ss:$12 sps:$4 sm:$0xff]  }
  0x90   : > { %587 = vmatpush1.bf16.msra.mxu0 %v5139_v2  ;;  %v5148_v5 = vld [vmem:[#allocation6 + $0x34] ss:$12 sps:$4 sm:$0xff]   ;;  %v5150_v6 = vld [vmem:[#allocation6 + $0x30] ss:$12 sps:$4 sm:$0xff]   ;;  %v5156_v8 = vld [vmem:[#allocation6 + $0x4c] ss:$12 sps:$4 sm:$0xff]  }
  0x91   : > { %588 = vmatprep.subr.bf16.mxu0 %v5142_v3  ;;  %v5153_v7 = vld [vmem:[#allocation6 + $0x8] ss:$12 sps:$4 sm:$0xff]   ;;  %v5159_v9 = vld [vmem:[#allocation6 + $0x20] ss:$12 sps:$4 sm:$0xff]   ;;  %v5165_v11 = vld [vmem:[#allocation6 + $0x64] ss:$12 sps:$4 sm:$0xff]  }
  0x92   : > { %4072 = vmatprep.subr.bf16.mxu1 %v5153_v7  ;;  %v5161_v10 = vld [vmem:[#allocation6 + $0x48] ss:$12 sps:$4 sm:$0xff]   ;;  %v5169_v12 = vld [vmem:[#allocation6 + $0x38] ss:$12 sps:$4 sm:$0xff]   ;;  %v5171_v13 = vld [vmem:[#allocation6 + $0x60] ss:$12 sps:$4 sm:$0xff]  }
  0x93   : > { %4073 = vmatpush3.bf16.msra.mxu1 %v5153_v7  ;;  %v5174_v14 = vld [vmem:[#allocation6 + $0x50] ss:$12 sps:$4 sm:$0xff]   ;;  %v5182_v17 = vld [vmem:[#allocation6 + $0x78] ss:$12 sps:$4 sm:$0xff]   ;;  %v5187_v18 = vld [vmem:[#allocation6 + $0x68] ss:$12 sps:$4 sm:$0xff]  }
  0x94   : > { %589 = vmatpush1.bf16.msra.mxu0 %v5145_v4  ;;  %4074 = vmatprep.subr.bf16.mxu1 %v5159_v9  ;;  %v4609_v15 = vld [vmem:[%s5122_s21] ss:$16 sps:$4 sm:$0xff]   ;;  %v5180_v16 = vld [vmem:[#allocation6 + $0x7c] ss:$12 sps:$4 sm:$0xff]   ;;  %v5196_v22 = vld [vmem:[#allocation6 + $0xac] ss:$12 sps:$4 sm:$0xff]  }
  0x95   : > { %590 = vmatprep.subr.bf16.mxu0 %v5148_v5  ;;  %4088 = vmatprep.mubr.bf16.mxu1 %v4609_v15  ;;  %v5190_v19 = vld [vmem:[#allocation6 + $0x94] ss:$12 sps:$4 sm:$0xff]   ;;  %v5192_v20 = vld [vmem:[#allocation6 + $0x90] ss:$12 sps:$4 sm:$0xff]   ;;  %v5204_v24 = vld [vmem:[#allocation6 + $0x98] ss:$12 sps:$4 sm:$0xff]  }
  0x96   : > { %v5194_v21 = vld [vmem:[#allocation6 + $0x80] ss:$12 sps:$4 sm:$0xff]   ;;  %v5202_v23 = vld [vmem:[#allocation6 + $0xa8] ss:$12 sps:$4 sm:$0xff]   ;;  %v5211_v25 = vld [vmem:[#allocation6 + $0xb0] ss:$12 sps:$4 sm:$0xff]  }
  0x97   : > { %4075 = vmatpush3.bf16.msra.mxu1 %v5159_v9  ;;  %v4613_v26 = vld [vmem:[%s5122_s21 + $0x20] ss:$16 sps:$4 sm:$0xff]   ;;  %v5237_v27 = vld [vmem:[%s5122_s21 + $0x4] ss:$16 sps:$4 sm:$0xff]   ;;  %v5286_v30 = vld [vmem:[%s5947_s3 + $0x8] sm:$0xff]   ;;  %vm812_vm1 = vcmask 785408  }
  0x98   : > { %591 = vmatpush1.bf16.msra.mxu0 %v5150_v6  ;;  %4076 = vmatprep.subr.bf16.mxu1 %v5169_v12  ;;  %v5246_v28 = vld [vmem:[%s5122_s21 + $0x24] ss:$16 sps:$4 sm:$0xff]   ;;  %v5303_v32 = vld [vmem:[%s5947_s3 + $0x18] sm:$0xff]   ;;  %v5342_v54 = vld [vmem:[%s5946_s2 + $0x8] sm:$0xff]   ;;  %s4880_s17 = smov 32   ;;  %s4881_s11 = smov 64  }
  0x99   : > { %592 = vmatprep.subr.bf16.mxu0 %v5156_v8  ;;  %v5280_v29 = vld [vmem:[%s5947_s3] sm:$0xff]   ;;  %v5298_v31 = vld [vmem:[%s5947_s3 + $0x10] sm:$0xff]   ;;  %v5317_v34 = vld [vmem:[%s5122_s21 + $0x8] ss:$16 sps:$4 sm:$0xff]   ;;  %4567 = vrot.lane.b32.xlu1 %v4879_v0, %s4880_s17  ;;  %s4882_s14 = smov 96   ;;  %vm1850_vm2 = vcmask 523264  }
  0x9a   : > { %v5312_v33 = vld [vmem:[%s5946_s2] sm:$0xff]   ;;  %v5324_v35 = vld [vmem:[%s5122_s21 + $0x28] ss:$16 sps:$4 sm:$0xff]   ;;  %v5347_v55 = vld [vmem:[%s5946_s2 + $0x10] sm:$0xff]   ;;  %4562 = vrot.lane.b32.xlu0 %v4879_v0, %s4880_s17  ;;  %s5875_s30 = scalar_lea.vmem [#allocation11], %s3684_s8  ;;  %s3887_s8 = sshll.u32 %s4947_s28, 10 }
  0x9b   : > { %4077 = vmatpush3.bf16.msra.mxu1 %v5169_v12  ;;  %v5359_v62 = vld [vmem:[%s5946_s2 + $0x18] sm:$0xff]   ;;  %s3572_s9 = sshll.u32 %s5875_s30, 4  ;;  %s3559_s28 = scalar_lea.sflag [#allocation5], %s5116_s1  ;;  %s5897_s9 = int_to_ptr.vmem [resolvable:$true] %s3572_s9 }
  0x9c   : > { %593 = vmatpush1.bf16.msra.mxu0 %v5161_v10  ;;  %4078 = vmatprep.subr.bf16.mxu1 %v5174_v14 }
  0x9d   : > { %594 = vmatprep.subr.bf16.mxu0 %v5165_v11 }
  0x9f   : > { %4079 = vmatpush3.bf16.msra.mxu1 %v5174_v14 }
  0xa0   : > { %595 = vmatpush1.bf16.msra.mxu0 %v5171_v13  ;;  %4080 = vmatprep.subr.bf16.mxu1 %v5187_v18 }
  0xa1   : > { %596 = vmatprep.subr.bf16.mxu0 %v5180_v16 }
  0xa3   : > { %4081 = vmatpush3.bf16.msra.mxu1 %v5187_v18 }
  0xa4   : > { %597 = vmatpush1.bf16.msra.mxu0 %v5182_v17  ;;  %4082 = vmatprep.subr.bf16.mxu1 %v5194_v21 }
  0xa5   : > { %598 = vmatprep.subr.bf16.mxu0 %v5190_v19 }
  0xa7   : > { %4083 = vmatpush3.bf16.msra.mxu1 %v5194_v21 }
  0xa8   : > { %599 = vmatpush1.bf16.msra.mxu0 %v5192_v20  ;;  %4084 = vmatprep.subr.bf16.mxu1 %v5204_v24 }
  0xa9   : > { %600 = vmatprep.subr.bf16.mxu0 %v5196_v22 }
  0xab   : > { %4085 = vmatpush3.bf16.msra.mxu1 %v5204_v24 }
  0xac   : > { %601 = vmatpush1.bf16.msra.mxu0 %v5202_v23  ;;  %4086 = vmatprep.subr.bf16.mxu1 %v5211_v25 }
  0xad   : > { %914 = vmatprep.subr.bf16.mxu0 %v5137_v1 }
  0xaf   : > { %619 = vmatmul.mubr.bf16.vlgmr.msra.gmra.mrb[0].mxu0 %v4609_v15  ;;  %4087 = vmatpush3.bf16.msra.mxu1 %v5211_v25 }
  0xb0   : > { %915 = vmatpush1.bf16.msra.mxu0 %v5139_v2  ;;  %628 = vmatprep.mubr.bf16.mxu0 %v4879_v0 }
  0xb1   : > { %916 = vmatprep.subr.bf16.mxu0 %v5142_v3  ;;  %4092 = vmatprep.subr.bf16.mxu1 %v4609_v15 }
  0xb2   : > { %4089 = vmatmul.mubr.bf16.vlgmr.msra.gmra.mrb[0].mxu1 %v4613_v26 }
  0xb3   : > { %4093 = vmatpush3.bf16.msra.mxu1 %v4609_v15  ;;  %4096 = vmatprep.mubr.msk.bf16.mxu1 %vm714_vm0, %v5280_v29 }
  0xb4   : > { %917 = vmatpush1.bf16.msra.mxu0 %v5145_v4  ;;  %4094 = vmatprep.subr.bf16.mxu1 %v4613_v26 }
  0xb5   : > { %918 = vmatprep.subr.bf16.mxu0 %v5148_v5 }
  0xb7   : > { %629 = vmatmul.mubr.bf16.gmra.mrb[4].mxu0 %v4613_v26  ;;  %4095 = vmatpush3.bf16.msra.mxu1 %v4613_v26 }
  0xb8   : > { %919 = vmatpush1.bf16.msra.mxu0 %v5150_v6  ;;  %946 = vmatprep.mubr.bf16.mxu0 %v4879_v0 }
  0xb9   : > { %920 = vmatprep.subr.bf16.mxu0 %v5156_v8 }
  0xba   : > { %4097 = vmatmul.mubr.msk.bf16.vlgmr.msra.gmra.mrb[4].mxu1 %vm714_vm0, %v5286_v30 }
  0xbb   : > { %4100 = vmatprep.mubr.msk.bf16.mxu1 %vm714_vm0, %v5298_v31 }
  0xbc   : > { %921 = vmatpush1.bf16.msra.mxu0 %v5161_v10 }
  0xbd   : > { %922 = vmatprep.subr.bf16.mxu0 %v5165_v11 }
  0xc0   : > { %923 = vmatpush1.bf16.msra.mxu0 %v5171_v13 }
  0xc1   : > { %924 = vmatprep.subr.bf16.mxu0 %v5180_v16 }
  0xc2   : > { %4101 = vmatmul.mubr.msk.bf16.gmra.mrb[8].mxu1 %vm714_vm0, %v5303_v32 }
  0xc3   : > { %4116 = vmatprep.mubr.msk.bf16.mxu1 %vm812_vm1, %v5312_v33 }
  0xc4   : > { %925 = vmatpush1.bf16.msra.mxu0 %v5182_v17 }
  0xc5   : > { %926 = vmatprep.subr.bf16.mxu0 %v5190_v19 }
  0xc8   : > { %927 = vmatpush1.bf16.msra.mxu0 %v5192_v20 }
  0xc9   : > { %928 = vmatprep.subr.bf16.mxu0 %v5196_v22 }
  0xcc   : > { %929 = vmatpush1.bf16.msra.mxu0 %v5202_v23 }
  0xcd   : > { %4124 = vmatprep.subr.bf16.mxu0 %v5153_v7 }
  0xcf   : > { %947 = vmatmul.mubr.bf16.vlgmr.msra.gmra.mrb[8].mxu0 %v5237_v27 }
  0xd0   : > { %4125 = vmatpush3.bf16.msra.mxu0 %v5153_v7  ;;  %956 = vmatprep.mubr.bf16.mxu0 %v4879_v0 }
  0xd1   : > { %4126 = vmatprep.subr.bf16.mxu0 %v5159_v9 }
  0xd4   : > { %4127 = vmatpush3.bf16.msra.mxu0 %v5159_v9 }
  0xd5   : > { %4128 = vmatprep.subr.bf16.mxu0 %v5169_v12 }
  0xd7   : > { %957 = vmatmul.mubr.bf16.gmra.mrb[12].mxu0 %v5246_v28 }
  0xd8   : > { %4129 = vmatpush3.bf16.msra.mxu0 %v5169_v12  ;;  %4140 = vmatprep.mubr.bf16.mxu0 %v5237_v27 }
  0xd9   : > { %4130 = vmatprep.subr.bf16.mxu0 %v5174_v14 }
  0xdc   : > { %4131 = vmatpush3.bf16.msra.mxu0 %v5174_v14 }
  0xdd   : > { %4132 = vmatprep.subr.bf16.mxu0 %v5187_v18 }
  0xe0   : > { %4133 = vmatpush3.bf16.msra.mxu0 %v5187_v18 }
  0xe1   : > { %4134 = vmatprep.subr.bf16.mxu0 %v5194_v21 }
  0xe4   : > { %4135 = vmatpush3.bf16.msra.mxu0 %v5194_v21 }
  0xe5   : > { %4136 = vmatprep.subr.bf16.mxu0 %v5204_v24 }
  0xe8   : > { %4137 = vmatpush3.bf16.msra.mxu0 %v5204_v24 }
  0xe9   : > { %4138 = vmatprep.subr.bf16.mxu0 %v5211_v25 }
  0xec   : > { %4139 = vmatpush3.bf16.msra.mxu0 %v5211_v25 }
  0xed   : > { %1180 = vmatprep.subr.bf16.mxu0 %v5137_v1 }
  0xef   : > { %4141 = vmatmul.mubr.bf16.vlgmr.msra.gmra.mrb[16].mxu0 %v5246_v28 }
  0xf0   : > { %1181 = vmatpush1.bf16.msra.mxu0 %v5139_v2  ;;  %1212 = vmatprep.mubr.bf16.mxu0 %v4879_v0 }
  0xf1   : > { %1182 = vmatprep.subr.bf16.mxu0 %v5142_v3 }
  0xf4   : > { %1183 = vmatpush1.bf16.msra.mxu0 %v5145_v4 }
  0xf5   : > { %1184 = vmatprep.subr.bf16.mxu0 %v5148_v5 }
  0xf8   : > { %1185 = vmatpush1.bf16.msra.mxu0 %v5150_v6 }
  0xf9   : > { %1186 = vmatprep.subr.bf16.mxu0 %v5156_v8 }
  0xfc   : > { %1187 = vmatpush1.bf16.msra.mxu0 %v5161_v10 }
  0xfd   : > { %1188 = vmatprep.subr.bf16.mxu0 %v5165_v11 }
 0x100   : > { %1189 = vmatpush1.bf16.msra.mxu0 %v5171_v13 }
 0x101   : > { %1190 = vmatprep.subr.bf16.mxu0 %v5180_v16 }
 0x104   : > { %1191 = vmatpush1.bf16.msra.mxu0 %v5182_v17 }
 0x105   : > { %1192 = vmatprep.subr.bf16.mxu0 %v5190_v19 }
 0x108   : > { %1193 = vmatpush1.bf16.msra.mxu0 %v5192_v20 }
 0x109   : > { %1194 = vmatprep.subr.bf16.mxu0 %v5196_v22 }
 0x10c   : > { %1195 = vmatpush1.bf16.msra.mxu0 %v5202_v23 }
 0x10d   : > { %4196 = vmatprep.subr.bf16.mxu0 %v5317_v34 }
 0x10f   : > { %1213 = vmatmul.mubr.bf16.vlgmr.msra.gmra.mrb[20].mxu0 %v5317_v34 }
 0x110   : > { %1222 = vmatprep.mubr.bf16.mxu0 %v4879_v0  ;;  %4197 = vmatpush3.bf16.msra.mxu0 %v5317_v34 }
 0x111   : > { %4198 = vmatprep.subr.bf16.mxu0 %v5324_v35 }
 0x114   : > { %4199 = vmatpush3.bf16.msra.mxu0 %v5324_v35 }
 0x117   : > { %1223 = vmatmul.mubr.bf16.gmra.mrb[24].mxu0 %v5324_v35 }
 0x118   : > { %4200 = vmatprep.mubr.msk.bf16.mxu0 %vm714_vm0, %v5280_v29 }
 0x11f   : > { %4201 = vmatmul.mubr.msk.bf16.vlgmr.msra.gmra.mrb[28].mxu0 %vm714_vm0, %v5286_v30 }
 0x120   : > { %4204 = vmatprep.mubr.msk.bf16.mxu0 %vm714_vm0, %v5298_v31 }
 0x127   : > { %4205 = vmatmul.mubr.msk.bf16.gmra.mrb[32].mxu0 %vm714_vm0, %v5303_v32 }
 0x128   : > { %4220 = vmatprep.mubr.msk.bf16.mxu0 %vm812_vm1, %v5312_v33 }
 0x182   : > { %v620_v36 = vpop.f32.mrb[0].mxu0 }
 0x183   : > { %v622_v37 = vpop.f32.mrb[1].mxu0 }
 0x184   : > { %v624_v38 = vpop.f32.mrb[2].mxu0 }
 0x185   : > { %v688_v39 = vpack.c.bf16 %v624_v38, %v620_v36  ;;  %v626_v40 = vpop.f32.mrb[3].mxu0  ;;  %v4090_v42 = vpop.f32.mrb[0].mxu1 }
 0x186   : > { %v690_v41 = vpack.c.bf16 %v626_v40, %v622_v37  ;;  %v673_v44 = vpop.f32.mrb[1].mxu1 }
 0x187   : > { %4104 = vmatprep.subr.bf16.mxu1 %v688_v39  ;;  %v4091_v46 = vpop.f32.mrb[2].mxu1 }
 0x188   : > { %4105 = vmatpush3.bf16.msra.mxu1 %v688_v39  ;;  %v693_v48 = vpack.c.bf16 %v4091_v46, %v4090_v42  ;;  %v676_v49 = vpop.f32.mrb[3].mxu1 }
 0x189   : > { %v692_v52 = vpack.c.bf16 %v676_v49, %v673_v44 }
 0x18a   : > { %v630_v43 = vpop.f32.mrb[4].mxu0 }
 0x18b   : > { %v632_v45 = vpop.f32.mrb[5].mxu0 }
 0x18c   : > { %v634_v47 = vpop.f32.mrb[6].mxu0 }
 0x18d   : > { %v689_v50 = vpack.c.bf16 %v634_v47, %v630_v43  ;;  %v636_v51 = vpop.f32.mrb[7].mxu0 }
 0x18e   : > { %v691_v53 = vpack.c.bf16 %v636_v51, %v632_v45 }
 0x18f   : > { %4106 = vmatprep.subr.bf16.mxu1 %v689_v50 }
 0x190   : > { %4107 = vmatpush3.bf16.msra.mxu1 %v689_v50 }
 0x191   : > { %4108 = vmatprep.subr.bf16.mxu1 %v690_v41 }
 0x194   : > { %4109 = vmatpush3.bf16.msra.mxu1 %v690_v41 }
 0x195   : > { %4110 = vmatprep.subr.bf16.mxu1 %v691_v53 }
 0x198   : > { %4111 = vmatpush3.bf16.msra.mxu1 %v691_v53 }
 0x199   : > { %4112 = vmatprep.subr.bf16.mxu1 %v692_v52 }
 0x19c   : > { %4113 = vmatpush3.bf16.msra.mxu1 %v692_v52 }
 0x19d   : > { %4114 = vmatprep.subr.bf16.mxu1 %v693_v48 }
 0x1a0   : > { %4115 = vmatpush3.bf16.msra.mxu1 %v693_v48 }
 0x1a1   : > { %4144 = vmatprep.subr.bf16.mxu1 %v5237_v27 }
 0x1a2   : > { %v948_v56 = vpop.f32.mrb[8].mxu0 }
 0x1a3   : > { %4117 = vmatmul.mubr.msk.bf16.vlgmr.msra.gmra.mrb[4].mxu1 %vm812_vm1, %v5342_v54  ;;  %v950_v57 = vpop.f32.mrb[9].mxu0 }
 0x1a4   : > { %v952_v58 = vpop.f32.mrb[10].mxu0  ;;  %4145 = vmatpush3.bf16.msra.mxu1 %v5237_v27  ;;  %4120 = vmatprep.mubr.msk.bf16.mxu1 %vm812_vm1, %v5347_v55 }
 0x1a5   : > { %v1016_v59 = vpack.c.bf16 %v952_v58, %v948_v56  ;;  %v954_v60 = vpop.f32.mrb[11].mxu0  ;;  %4146 = vmatprep.subr.bf16.mxu1 %v5246_v28 }
 0x1a6   : > { %v1018_v61 = vpack.c.bf16 %v954_v60, %v950_v57 }
 0x1a8   : > { %4147 = vmatpush3.bf16.msra.mxu1 %v5246_v28 }
 0x1a9   : > { %4156 = vmatprep.subr.bf16.mxu1 %v1016_v59 }
 0x1aa   : > { %v958_v63 = vpop.f32.mrb[12].mxu0 }
 0x1ab   : > { %4121 = vmatmul.mubr.msk.bf16.gmra.mrb[8].mxu1 %vm812_vm1, %v5359_v62  ;;  %v960_v15 = vpop.f32.mrb[13].mxu0 }
 0x1ac   : > { %4148 = vmatprep.mubr.msk.bf16.mxu1 %vm714_vm0, %v5280_v29  ;;  %v962_v26 = vpop.f32.mrb[14].mxu0 }
 0x1ad   : > { %v1017_v27 = vpack.c.bf16 %v962_v26, %v958_v63  ;;  %v964_v36 = vpop.f32.mrb[15].mxu0 }
 0x1ae   : > { %v1019_v37 = vpack.c.bf16 %v964_v36, %v960_v15 }
 0x1b3   : > { %4149 = vmatmul.mubr.msk.bf16.vlgmr.msra.gmra.mrb[12].mxu1 %vm714_vm0, %v5286_v30 }
 0x1b4   : > { %4157 = vmatpush3.bf16.msra.mxu1 %v1016_v59  ;;  %4152 = vmatprep.mubr.msk.bf16.mxu1 %vm714_vm0, %v5298_v31 }
 0x1b5   : > { %4158 = vmatprep.subr.bf16.mxu1 %v1017_v27 }
 0x1b8   : > { %4159 = vmatpush3.bf16.msra.mxu1 %v1017_v27 }
 0x1b9   : > { %4160 = vmatprep.subr.bf16.mxu1 %v1018_v61 }
 0x1bb   : > { %4153 = vmatmul.mubr.msk.bf16.gmra.mrb[16].mxu1 %vm714_vm0, %v5303_v32 }
 0x1bc   : > { %4161 = vmatpush3.bf16.msra.mxu1 %v1018_v61  ;;  %4168 = vmatprep.mubr.msk.bf16.mxu1 %vm812_vm1, %v5312_v33 }
 0x1bd   : > { %4162 = vmatprep.subr.bf16.mxu1 %v1019_v37 }
 0x1c0   : > { %4163 = vmatpush3.bf16.msra.mxu1 %v1019_v37 }
 0x1c2   : > { %v4142_v28 = vpop.f32.mrb[16].mxu0 }
 0x1c3   : > { %v1001_v38 = vpop.f32.mrb[17].mxu0 }
 0x1c4   : > { %v4143_v39 = vpop.f32.mrb[18].mxu0 }
 0x1c5   : > { %v1021_v40 = vpack.c.bf16 %v4143_v39, %v4142_v28  ;;  %v1004_v41 = vpop.f32.mrb[19].mxu0 }
 0x1c6   : > { %v1020_v42 = vpack.c.bf16 %v1004_v41, %v1001_v38 }
 0x1c8   : > { %4164 = vmatprep.subr.bf16.mxu1 %v1020_v42 }
 0x1c9   : > { %4165 = vmatpush3.bf16.msra.mxu1 %v1020_v42 }
 0x1ca   : > { %4166 = vmatprep.subr.bf16.mxu1 %v1021_v40 }
 0x1cd   : > { %4167 = vmatpush3.bf16.msra.mxu1 %v1021_v40 }
 0x1ce   : > { %4176 = vmatprep.subr.bf16.mxu1 %v5153_v7 }
 0x1d0   : > { %4169 = vmatmul.mubr.msk.bf16.vlgmr.msra.gmra.mrb[12].mxu1 %vm812_vm1, %v5342_v54 }
 0x1d1   : > { %4177 = vmatpush3.bf16.msra.mxu1 %v5153_v7  ;;  %4172 = vmatprep.mubr.msk.bf16.mxu1 %vm812_vm1, %v5347_v55 }
 0x1d2   : > { %4178 = vmatprep.subr.bf16.mxu1 %v5159_v9 }
 0x1d5   : > { %4179 = vmatpush3.bf16.msra.mxu1 %v5159_v9 }
 0x1d6   : > { %4180 = vmatprep.subr.bf16.mxu1 %v5169_v12 }
 0x1d8   : > { %4173 = vmatmul.mubr.msk.bf16.gmra.mrb[16].mxu1 %vm812_vm1, %v5359_v62 }
 0x1d9   : > { %4181 = vmatpush3.bf16.msra.mxu1 %v5169_v12  ;;  %4192 = vmatprep.mubr.bf16.mxu1 %v5317_v34 }
 0x1da   : > { %4182 = vmatprep.subr.bf16.mxu1 %v5174_v14 }
 0x1dd   : > { %4183 = vmatpush3.bf16.msra.mxu1 %v5174_v14 }
 0x1de   : > { %4184 = vmatprep.subr.bf16.mxu1 %v5187_v18 }
 0x1e1   : > { %4185 = vmatpush3.bf16.msra.mxu1 %v5187_v18 }
 0x1e2   : > { %4186 = vmatprep.subr.bf16.mxu1 %v5194_v21 }
 0x1e5   : > { %4187 = vmatpush3.bf16.msra.mxu1 %v5194_v21 }
 0x1e6   : > { %4188 = vmatprep.subr.bf16.mxu1 %v5204_v24 }
 0x1e9   : > { %4189 = vmatpush3.bf16.msra.mxu1 %v5204_v24 }
 0x1ea   : > { %4190 = vmatprep.subr.bf16.mxu1 %v5211_v25 }
 0x1ed   : > { %4191 = vmatpush3.bf16.msra.mxu1 %v5211_v25 }
 0x1ee   : > { %1442 = vmatprep.subr.bf16.mxu1 %v5137_v1  ;;  %v1214_v1 = vpop.f32.mrb[20].mxu0 }
 0x1f0   : > { %4193 = vmatmul.mubr.bf16.vlgmr.msra.gmra.mrb[20].mxu1 %v5324_v35 }
 0x1f1   : > { %1443 = vmatpush1.bf16.msra.mxu1 %v5139_v2  ;;  %1474 = vmatprep.mubr.bf16.mxu1 %v4879_v0  ;;  %v1216_v2 = vpop.f32.mrb[21].mxu0 }
 0x1f2   : > { %1444 = vmatprep.subr.bf16.mxu1 %v5142_v3  ;;  %v1218_v3 = vpop.f32.mrb[22].mxu0 }
 0x1f5   : > { %1445 = vmatpush1.bf16.msra.mxu1 %v5145_v4  ;;  %v1282_v4 = vpack.c.bf16 %v1218_v3, %v1214_v1 }
 0x1f6   : > { %1446 = vmatprep.subr.bf16.mxu1 %v5148_v5  ;;  %v1220_v5 = vpop.f32.mrb[23].mxu0 }
 0x1f7   : > { %4208 = vmatprep.subr.bf16.mxu0 %v1282_v4 }
 0x1f8   : > { %4209 = vmatpush3.bf16.msra.mxu0 %v1282_v4 }
 0x1f9   : > { %1447 = vmatpush1.bf16.msra.mxu1 %v5150_v6  ;;  %v1284_v6 = vpack.c.bf16 %v1220_v5, %v1216_v2 }
 0x1fa   : > { %1448 = vmatprep.subr.bf16.mxu1 %v5156_v8  ;;  %v1224_v8 = vpop.f32.mrb[24].mxu0 }
 0x1fd   : > { %1449 = vmatpush1.bf16.msra.mxu1 %v5161_v10  ;;  %v1226_v10 = vpop.f32.mrb[25].mxu0 }
 0x1fe   : > { %1450 = vmatprep.subr.bf16.mxu1 %v5165_v11  ;;  %v1228_v11 = vpop.f32.mrb[26].mxu0 }
 0x201   : > { %1451 = vmatpush1.bf16.msra.mxu1 %v5171_v13  ;;  %v1283_v13 = vpack.c.bf16 %v1228_v11, %v1224_v8 }
 0x202   : > { %1452 = vmatprep.subr.bf16.mxu1 %v5180_v16  ;;  %v1230_v16 = vpop.f32.mrb[27].mxu0 }
 0x203   : > { %4210 = vmatprep.subr.bf16.mxu0 %v1283_v13 }
 0x204   : > { %4211 = vmatpush3.bf16.msra.mxu0 %v1283_v13 }
 0x205   : > { %1453 = vmatpush1.bf16.msra.mxu1 %v5182_v17  ;;  %4212 = vmatprep.subr.bf16.mxu0 %v1284_v6  ;;  %v1285_v17 = vpack.c.bf16 %v1230_v16, %v1226_v10 }
 0x206   : > { %1454 = vmatprep.subr.bf16.mxu1 %v5190_v19  ;;  %v5420_v19 = vld [vmem:[%s5122_s21 + $0xc] ss:$16 sps:$4 sm:$0xff]  }
 0x208   : > { %4213 = vmatpush3.bf16.msra.mxu0 %v1284_v6 }
 0x209   : > { %1455 = vmatpush1.bf16.msra.mxu1 %v5192_v20  ;;  %4214 = vmatprep.subr.bf16.mxu0 %v1285_v17  ;;  %v5427_v20 = vld [vmem:[%s5122_s21 + $0x2c] ss:$16 sps:$4 sm:$0xff]  }
 0x20a   : > { %1456 = vmatprep.subr.bf16.mxu1 %v5196_v22 }
 0x20c   : > { %4215 = vmatpush3.bf16.msra.mxu0 %v1285_v17 }
 0x20d   : > { %1457 = vmatpush1.bf16.msra.mxu1 %v5202_v23 }
 0x20e   : > { %4248 = vmatprep.subr.bf16.mxu1 %v5420_v19 }
 0x210   : > { %1475 = vmatmul.mubr.bf16.vlgmr.msra.gmra.mrb[24].mxu1 %v5420_v19 }
 0x211   : > { %1484 = vmatprep.mubr.bf16.mxu1 %v4879_v0  ;;  %4249 = vmatpush3.bf16.msra.mxu1 %v5420_v19 }
 0x212   : > { %4250 = vmatprep.subr.bf16.mxu1 %v5427_v20 }
 0x215   : > { %4251 = vmatpush3.bf16.msra.mxu1 %v5427_v20 }
 0x218   : > { %1485 = vmatmul.mubr.bf16.gmra.mrb[28].mxu1 %v5427_v20 }
 0x219   : > { %4252 = vmatprep.mubr.msk.bf16.mxu1 %vm714_vm0, %v5280_v29 }
 0x220   : > { %4253 = vmatmul.mubr.msk.bf16.vlgmr.msra.gmra.mrb[32].mxu1 %vm714_vm0, %v5286_v30 }
 0x221   : > { %4256 = vmatprep.mubr.msk.bf16.mxu1 %vm714_vm0, %v5298_v31 }
 0x228   : > { %4257 = vmatmul.mubr.msk.bf16.gmra.mrb[36].mxu1 %vm714_vm0, %v5303_v32 }
 0x229   : > { %4272 = vmatprep.mubr.msk.bf16.mxu1 %vm812_vm1, %v5312_v33 }
 0x276   : > { %v4118_v22 = vpop.f32.mrb[4].mxu1 }
 0x277   : > { %v859_v23 = vpop.f32.mrb[5].mxu1  ;;  %v892_v35 = vmax.f32 %v4118_v22, 0.0 }
 0x278   : > { %v4119_v34 = vpop.f32.mrb[6].mxu1  ;;  %v890_v45 = vmax.f32 %v859_v23, 0.0 }
 0x279   : > { %v893_v43 = vmax.f32 %v4119_v34, 0.0  ;;  %v862_v44 = vpop.f32.mrb[7].mxu1 }
 0x27a   : > { %v891_v29 = vmax.f32 %v862_v44, 0.0 }
 0x27b   : > { %v5442_v46 = vpack.c.bf16 %v893_v43, %v892_v35 }
 0x27c   : > { %v5444_v30 = vpack.c.bf16 %v891_v29, %v890_v45 }
 0x27d   : > { %1789 = vrot.lane.b32.xlu1 %v5442_v46, %s4880_s17 }
 0x27e   : > { %1779 = vrot.lane.b32.xlu0 %v5444_v30, %s4880_s17  ;;  %v4122_v31 = vpop.f32.mrb[8].mxu1 }
 0x27f   : > { %v875_v32 = vpop.f32.mrb[9].mxu1  ;;  %v896_v47 = vmax.f32 %v4122_v31, 0.0 }
 0x280   : > { %v4123_v33 = vpop.f32.mrb[10].mxu1  ;;  %v894_v50 = vmax.f32 %v875_v32, 0.0 }
 0x281   : > { %v897_v48 = vmax.f32 %v4123_v33, 0.0  ;;  %v878_v49 = vpop.f32.mrb[11].mxu1 }
 0x282   : > { %v895_v51 = vmax.f32 %v878_v49, 0.0 }
 0x283   : > { %v5450_v52 = vpack.c.bf16 %v897_v48, %v896_v47 }
 0x284   : > { %v5452_v53 = vpack.c.bf16 %v895_v51, %v894_v50 }
 0x285   : > { %1809 = vrot.lane.b32.xlu0 %v5450_v52, %s4880_s17 }
 0x286   : > { %1799 = vrot.lane.b32.xlu1 %v5452_v53, %s4880_s17 }
 0x2a3   : > { %v4170_v56 = vpop.f32.mrb[12].mxu1 }
 0x2a4   : > { %v1121_v57 = vpop.f32.mrb[13].mxu1  ;;  %v1154_v59 = vmax.f32 %v4170_v56, 0.0 }
 0x2a5   : > { %v4171_v58 = vpop.f32.mrb[14].mxu1  ;;  %v1152_v63 = vmax.f32 %v1121_v57, 0.0 }
 0x2a6   : > { %v1155_v60 = vmax.f32 %v4171_v58, 0.0  ;;  %v1124_v61 = vpop.f32.mrb[15].mxu1 }
 0x2a7   : > { %v1153_v15 = vmax.f32 %v1124_v61, 0.0 }
 0x2a8   : > { %v5458_v26 = vpack.c.bf16 %v1155_v60, %v1154_v59 }
 0x2a9   : > { %v5460_v27 = vpack.c.bf16 %v1153_v15, %v1152_v63 }
 0x2aa   : > { %1791 = vrot.lane.b32.xlu0 %v5458_v26, %s4880_s17 }
 0x2ab   : > { %v4174_v36 = vpop.f32.mrb[16].mxu1 }
 0x2ac   : > { %v1137_v37 = vpop.f32.mrb[17].mxu1  ;;  %v1158_v38 = vmax.f32 %v4174_v36, 0.0 }
 0x2ad   : > { %v4175_v28 = vpop.f32.mrb[18].mxu1  ;;  %v1156_v41 = vmax.f32 %v1137_v37, 0.0 }
 0x2ae   : > { %v1159_v39 = vmax.f32 %v4175_v28, 0.0  ;;  %1781 = vrot.lane.b32.xlu0 %v5460_v27, %s4880_s17  ;;  %v1140_v40 = vpop.f32.mrb[19].mxu1 }
 0x2af   : > { %v1157_v42 = vmax.f32 %v1140_v40, 0.0 }
 0x2b0   : > { %v5466_v1 = vpack.c.bf16 %v1159_v39, %v1158_v38 }
 0x2b1   : > { %v5468_v2 = vpack.c.bf16 %v1157_v42, %v1156_v41 }
 0x2b3   : > { %1801 = vrot.lane.b32.xlu0 %v5468_v2, %s4880_s17 }
 0x2c3   : > { %v4194_v3 = vpop.f32.mrb[20].mxu1 }
 0x2c4   : > { %v1267_v4 = vpop.f32.mrb[21].mxu1 }
 0x2c5   : > { %v4195_v5 = vpop.f32.mrb[22].mxu1 }
 0x2c6   : > { %v1287_v6 = vpack.c.bf16 %v4195_v5, %v4194_v3  ;;  %v1270_v8 = vpop.f32.mrb[23].mxu1 }
 0x2c7   : > { %v1286_v10 = vpack.c.bf16 %v1270_v8, %v1267_v4 }
 0x2c9   : > { %4216 = vmatprep.subr.bf16.mxu0 %v1286_v10 }
 0x2ca   : > { %4217 = vmatpush3.bf16.msra.mxu0 %v1286_v10 }
 0x2cb   : > { %4218 = vmatprep.subr.bf16.mxu0 %v1287_v6 }
 0x2ce   : > { %4219 = vmatpush3.bf16.msra.mxu0 %v1287_v6 }
 0x2cf   : > { %4228 = vmatprep.subr.bf16.mxu0 %v5153_v7 }
 0x2d1   : > { %4221 = vmatmul.mubr.msk.bf16.vlgmr.msra.gmra.mrb[28].mxu0 %vm812_vm1, %v5342_v54 }
 0x2d2   : > { %4229 = vmatpush3.bf16.msra.mxu0 %v5153_v7  ;;  %4224 = vmatprep.mubr.msk.bf16.mxu0 %vm812_vm1, %v5347_v55  ;;  %v4563_v7 = vpop.permute.xlu0 %4562 }
 0x2d3   : > { %4230 = vmatprep.subr.bf16.mxu0 %v5159_v9 }
 0x2d6   : > { %4231 = vmatpush3.bf16.msra.mxu0 %v5159_v9 }
 0x2d7   : > { %4232 = vmatprep.subr.bf16.mxu0 %v5169_v12 }
 0x2d9   : > { %4225 = vmatmul.mubr.msk.bf16.gmra.mrb[32].mxu0 %vm812_vm1, %v5359_v62 }
 0x2da   : > { %4233 = vmatpush3.bf16.msra.mxu0 %v5169_v12  ;;  %4244 = vmatprep.mubr.bf16.mxu0 %v5420_v19 }
 0x2db   : > { %4234 = vmatprep.subr.bf16.mxu0 %v5174_v14 }
 0x2de   : > { %4235 = vmatpush3.bf16.msra.mxu0 %v5174_v14  ;;  %v5499_v14 = vpop.permute.xlu1 %4567 }
 0x2df   : > { %4236 = vmatprep.subr.bf16.mxu0 %v5187_v18  ;;  %v4569_v34 = vunpack.i.l.bf16 %v5499_v14 }
 0x2e2   : > { %4237 = vmatpush3.bf16.msra.mxu0 %v5187_v18 }
 0x2e3   : > { %4238 = vmatprep.subr.bf16.mxu0 %v5194_v21  ;;  %v1476_v44 = vpop.f32.mrb[24].mxu1 }
 0x2e4   : > { %v1478_v45 = vpop.f32.mrb[25].mxu1 }
 0x2e5   : > { %v1480_v29 = vpop.f32.mrb[26].mxu1 }
 0x2e6   : > { %4239 = vmatpush3.bf16.msra.mxu0 %v5194_v21  ;;  %v4564_v21 = vunpack.i.l.bf16 %v4563_v7  ;;  %v1544_v32 = vpack.c.bf16 %v1480_v29, %v1476_v44  ;;  %v1482_v33 = vpop.f32.mrb[27].mxu1 }
 0x2e7   : > { %4240 = vmatprep.subr.bf16.mxu0 %v5204_v24  ;;  %v1546_v47 = vpack.c.bf16 %v1482_v33, %v1478_v45 }
 0x2e8   : > { %4260 = vmatprep.subr.bf16.mxu1 %v1544_v32 }
 0x2e9   : > { %4261 = vmatpush3.bf16.msra.mxu1 %v1544_v32 }
 0x2ea   : > { %4241 = vmatpush3.bf16.msra.mxu0 %v5204_v24 }
 0x2eb   : > { %4242 = vmatprep.subr.bf16.mxu0 %v5211_v25  ;;  %v1486_v48 = vpop.f32.mrb[28].mxu1 }
 0x2ec   : > { %v1488_v49 = vpop.f32.mrb[29].mxu1 }
 0x2ed   : > { %v1490_v50 = vpop.f32.mrb[30].mxu1 }
 0x2ee   : > { %4243 = vmatpush3.bf16.msra.mxu0 %v5211_v25  ;;  %v4565_v25 = vunpack.i.h.bf16 %v4563_v7  ;;  %v1545_v51 = vpack.c.bf16 %v1490_v50, %v1486_v48  ;;  %v1492_v56 = vpop.f32.mrb[31].mxu1 }
 0x2ef   : > { %v1790_v24 = vpop.permute.xlu1 %1789  ;;  %v1547_v57 = vpack.c.bf16 %v1492_v56, %v1488_v49 }
 0x2f0   : > { %v1780_v9 = vpop.permute.xlu0 %1779  ;;  %v1822_v35 = vsel %vm714_vm0, %v4565_v25, %v1790_v24  ;;  %4262 = vmatprep.subr.bf16.mxu1 %v1545_v51 }
 0x2f1   : > { %4245 = vmatmul.mubr.bf16.vlgmr.msra.gmra.mrb[36].mxu0 %v5427_v20  ;;  %v1818_v16 = vsel %vm714_vm0, %v4564_v21, %v1780_v9  ;;  %4263 = vmatpush3.bf16.msra.mxu1 %v1545_v51 }
 0x2f2   : > { %1895 = vmatprep.mubr.bf16.mxu0 %v4879_v0  ;;  %4264 = vmatprep.subr.bf16.mxu1 %v1546_v47 }
 0x2f5   : > { %4265 = vmatpush3.bf16.msra.mxu1 %v1546_v47 }
 0x2f6   : > { %4266 = vmatprep.subr.bf16.mxu1 %v1547_v57 }
 0x2f7   : > { %v5497_v12 = vpop.permute.xlu0 %1809 }
 0x2f8   : > { %v1800_v22 = vpop.permute.xlu1 %1799 }
 0x2f9   : > { %v1826_v31 = vsel %vm714_vm0, %v4569_v34, %v1800_v22  ;;  %4267 = vmatpush3.bf16.msra.mxu1 %v1547_v57 }
 0x31c   : > { %v5501_v18 = vpop.permute.xlu0 %1791 }
 0x31d   : > { %v1823_v17 = vsel %vm714_vm0, %v1790_v24, %v5501_v18 }
 0x320   : > { %v5503_v11 = vpop.permute.xlu0 %1781 }
 0x321   : > { %v1819_v13 = vsel %vm714_vm0, %v1780_v9, %v5503_v11 }
 0x322   : > { %1863 = vmatprep.subr.bf16.mxu0 %v1819_v13 }
 0x323   : > { %1864 = vmatpush1.bf16.msra.mxu0 %v1818_v16 }
 0x324   : > { %1865 = vmatprep.subr.bf16.mxu0 %v1823_v17 }
 0x325   : > { %v5510_v23 = vpop.permute.xlu0 %1801 }
 0x326   : > { %v1827_v43 = vsel %vm714_vm0, %v1800_v22, %v5510_v23 }
 0x327   : > { %1866 = vmatpush1.bf16.msra.mxu0 %v1822_v35 }
 0x328   : > { %1867 = vmatprep.subr.bf16.mxu0 %v1827_v43 }
 0x32b   : > { %1868 = vmatpush1.bf16.msra.mxu0 %v1826_v31 }
 0x3a4   : > { %v4222_v58 = vpop.f32.mrb[28].mxu0 }
 0x3a5   : > { %v1387_v59 = vpop.f32.mrb[29].mxu0  ;;  %v1420_v61 = vmax.f32 %v4222_v58, 0.0 }
 0x3a6   : > { %v4223_v60 = vpop.f32.mrb[30].mxu0  ;;  %v1418_v36 = vmax.f32 %v1387_v59, 0.0 }
 0x3a7   : > { %v1421_v63 = vmax.f32 %v4223_v60, 0.0  ;;  %v1390_v15 = vpop.f32.mrb[31].mxu0 }
 0x3a8   : > { %v1419_v37 = vmax.f32 %v1390_v15, 0.0 }
 0x3a9   : > { %v5517_v28 = vpack.c.bf16 %v1421_v63, %v1420_v61  ;;  %v4570_v63 = vunpack.i.h.bf16 %v5499_v14 }
 0x3aa   : > { %v5519_v38 = vpack.c.bf16 %v1419_v37, %v1418_v36 }
 0x3ab   : > { %1793 = vrot.lane.b32.xlu1 %v5517_v28, %s4880_s17 }
 0x3ac   : > { %v4226_v39 = vpop.f32.mrb[32].mxu0 }
 0x3ad   : > { %v1403_v40 = vpop.f32.mrb[33].mxu0  ;;  %v1424_v42 = vmax.f32 %v4226_v39, 0.0 }
 0x3ae   : > { %v4227_v41 = vpop.f32.mrb[34].mxu0  ;;  %v1422_v5 = vmax.f32 %v1403_v40, 0.0 }
 0x3af   : > { %v1425_v3 = vmax.f32 %v4227_v41, 0.0  ;;  %v1406_v4 = vpop.f32.mrb[35].mxu0  ;;  %1783 = vrot.lane.b32.xlu1 %v5519_v38, %s4880_s17  ;;  %v1830_v41 = vsel %vm714_vm0, %v4570_v63, %v5497_v12 }
 0x3b0   : > { %v1423_v6 = vmax.f32 %v1406_v4, 0.0 }
 0x3b1   : > { %v5525_v8 = vpack.c.bf16 %v1425_v3, %v1424_v42  ;;  %v4633_v3 = vld [vmem:[#allocation8 + $0x20] sm:$0xff]  }
 0x3b2   : > { %v5527_v10 = vpack.c.bf16 %v1423_v6, %v1422_v5 }
 0x3b4   : > { %1803 = vrot.lane.b32.xlu1 %v5527_v10, %s4880_s17 }
 0x3c4   : > { %v4246_v7 = vpop.f32.mrb[36].mxu0 }
 0x3c5   : > { %v1529_v9 = vpop.f32.mrb[37].mxu0 }
 0x3c6   : > { %v4247_v21 = vpop.f32.mrb[38].mxu0 }
 0x3c7   : > { %v1549_v24 = vpack.c.bf16 %v4247_v21, %v4246_v7  ;;  %v1532_v13 = vpop.f32.mrb[39].mxu0 }
 0x3c8   : > { %v1548_v25 = vpack.c.bf16 %v1532_v13, %v1529_v9 }
 0x3ca   : > { %4268 = vmatprep.subr.bf16.mxu1 %v1548_v25 }
 0x3cb   : > { %4269 = vmatpush3.bf16.msra.mxu1 %v1548_v25  ;;  %v4634_v25 = vld [vmem:[#allocation8 + $0x28] sm:$0xff]  }
 0x3cc   : > { %4270 = vmatprep.subr.bf16.mxu1 %v1549_v24 }
 0x3cf   : > { %4271 = vmatpush3.bf16.msra.mxu1 %v1549_v24 }
 0x3d2   : > { %4273 = vmatmul.mubr.msk.bf16.vlgmr.msra.gmra.mrb[32].mxu1 %vm812_vm1, %v5342_v54 }
 0x3d3   : > { %4276 = vmatprep.mubr.msk.bf16.mxu1 %vm812_vm1, %v5347_v55 }
 0x3da   : > { %4277 = vmatmul.mubr.msk.bf16.gmra.mrb[36].mxu1 %vm812_vm1, %v5359_v62 }
 0x3db   : > { %1968 = vmatprep.mubr.bf16.mxu1 %v4879_v0 }
 0x41d   : > { %v1794_v56 = vpop.permute.xlu1 %1793 }
 0x41e   : > { %v1824_v42 = vsel %vm714_vm0, %v5501_v18, %v1794_v56 }
 0x421   : > { %v1784_v57 = vpop.permute.xlu1 %1783 }
 0x422   : > { %v1820_v15 = vsel %vm714_vm0, %v5503_v11, %v1784_v57 }
 0x426   : > { %v1804_v58 = vpop.permute.xlu1 %1803 }
 0x427   : > { %v1828_v5 = vsel %vm714_vm0, %v5510_v23, %v1804_v58 }
 0x4a5   : > { %v4274_v16 = vpop.f32.mrb[32].mxu1 }
 0x4a6   : > { %v1649_v17 = vpop.f32.mrb[33].mxu1  ;;  %v1682_v34 = vmax.f32 %v4274_v16, 0.0 }
 0x4a7   : > { %v4275_v22 = vpop.f32.mrb[34].mxu1  ;;  %v1680_v44 = vmax.f32 %v1649_v17, 0.0 }
 0x4a8   : > { %v1683_v35 = vmax.f32 %v4275_v22, 0.0  ;;  %v1652_v43 = vpop.f32.mrb[35].mxu1 }
 0x4a9   : > { %v1681_v45 = vmax.f32 %v1652_v43, 0.0 }
 0x4aa   : > { %v5538_v29 = vpack.c.bf16 %v1683_v35, %v1682_v34 }
 0x4ab   : > { %v5540_v31 = vpack.c.bf16 %v1681_v45, %v1680_v44 }
 0x4ac   : > { %1795 = vrot.lane.b32.xlu0 %v5538_v29, %s4880_s17 }
 0x4ad   : > { %v4278_v54 = vpop.f32.mrb[36].mxu1  ;;  %1785 = vrot.lane.b32.xlu1 %v5540_v31, %s4880_s17 }
 0x4ae   : > { %v1665_v55 = vpop.f32.mrb[37].mxu1  ;;  %v1686_v32 = vmax.f32 %v4278_v54, 0.0 }
 0x4af   : > { %v4279_v62 = vpop.f32.mrb[38].mxu1  ;;  %v1684_v48 = vmax.f32 %v1665_v55, 0.0  ;;  %v4635_v55 = vld [vmem:[#allocation8 + $0x30] sm:$0xff]  }
 0x4b0   : > { %v1687_v33 = vmax.f32 %v4279_v62, 0.0  ;;  %v1668_v47 = vpop.f32.mrb[39].mxu1  ;;  %1813 = vrot.lane.b32.xlu0 %v5525_v8, %s4880_s17 }
 0x4b1   : > { %v1685_v49 = vmax.f32 %v1668_v47, 0.0  ;;  %1811 = vrot.lane.b32.xlu1 %v5466_v1, %s4880_s17 }
 0x4b2   : > { %v5550_v50 = vpack.c.bf16 %v1687_v33, %v1686_v32 }
 0x4b3   : > { %v5552_v51 = vpack.c.bf16 %v1685_v49, %v1684_v48 }
 0x4b5   : > { %1805 = vrot.lane.b32.xlu0 %v5552_v51, %s4880_s17  ;;  %1815 = vrot.lane.b32.xlu1 %v5550_v50, %s4880_s17 }
 0x4b9   : > { %2031 = vrot.lane.b32.xlu0 %v5444_v30, %s4881_s11  ;;  %2033 = vrot.lane.b32.xlu1 %v5460_v27, %s4881_s11 }
 0x4bd   : > { %2035 = vrot.lane.b32.xlu0 %v5519_v38, %s4881_s11  ;;  %2037 = vrot.lane.b32.xlu1 %v5540_v31, %s4881_s11 }
 0x4c1   : > { %4572 = vrot.lane.b32.xlu0 %v4879_v0, %s4881_s11  ;;  %2041 = vrot.lane.b32.xlu1 %v5442_v46, %s4881_s11 }
 0x4c5   : > { %2043 = vrot.lane.b32.xlu0 %v5458_v26, %s4881_s11  ;;  %2045 = vrot.lane.b32.xlu1 %v5517_v28, %s4881_s11 }
 0x4c9   : > { %2047 = vrot.lane.b32.xlu0 %v5538_v29, %s4881_s11  ;;  %2051 = vrot.lane.b32.xlu1 %v5452_v53, %s4881_s11 }
 0x4cd   : > { %2053 = vrot.lane.b32.xlu0 %v5468_v2, %s4881_s11  ;;  %2055 = vrot.lane.b32.xlu1 %v5527_v10, %s4881_s11 }
 0x4d1   : > { %2061 = vrot.lane.b32.xlu0 %v5450_v52, %s4881_s11  ;;  %2049 = vrot.lane.b32.xlu1 %v4879_v0, %s4881_s11 }
 0x4d5   : > { %2057 = vrot.lane.b32.xlu0 %v5552_v51, %s4881_s11  ;;  %2063 = vrot.lane.b32.xlu1 %v5466_v1, %s4881_s11 }
 0x4d9   : > { %2065 = vrot.lane.b32.xlu0 %v5525_v8, %s4881_s11  ;;  %2067 = vrot.lane.b32.xlu1 %v5550_v50, %s4881_s11 }
 0x4dd   : > { %2059 = vrot.lane.b32.xlu0 %v4879_v0, %s4881_s11  ;;  %2514 = vrot.lane.b32.xlu1 %v5460_v27, %s4882_s14 }
 0x4e1   : > { %2516 = vrot.lane.b32.xlu0 %v5519_v38, %s4882_s14  ;;  %2518 = vrot.lane.b32.xlu1 %v5540_v31, %s4882_s14 }
 0x4e5   : > { %4577 = vrot.lane.b32.xlu0 %v4879_v0, %s4882_s14  ;;  %2512 = vrot.lane.b32.xlu1 %v5444_v30, %s4882_s14 }
 0x4e9   : > { %2524 = vrot.lane.b32.xlu0 %v5458_v26, %s4882_s14  ;;  %2526 = vrot.lane.b32.xlu1 %v5517_v28, %s4882_s14 }
 0x4ed   : > { %2528 = vrot.lane.b32.xlu0 %v5538_v29, %s4882_s14  ;;  %2522 = vrot.lane.b32.xlu1 %v5442_v46, %s4882_s14 }
 0x4f1   : > { %2534 = vrot.lane.b32.xlu0 %v5468_v2, %s4882_s14  ;;  %2536 = vrot.lane.b32.xlu1 %v5527_v10, %s4882_s14 }
 0x4f5   : > { %2532 = vrot.lane.b32.xlu0 %v5452_v53, %s4882_s14  ;;  %2540 = vrot.lane.b32.xlu1 %v4879_v0, %s4882_s14 }
 0x4f9   : > { %2546 = vrot.lane.b32.xlu0 %v5525_v8, %s4882_s14  ;;  %2544 = vrot.lane.b32.xlu1 %v5466_v1, %s4882_s14 }
 0x4fd   : > { %2538 = vrot.lane.b32.xlu0 %v5552_v51, %s4882_s14  ;;  %2548 = vrot.lane.b32.xlu1 %v5550_v50, %s4882_s14 }
 0x501   : > { %2550 = vrot.lane.b32.xlu0 %v4879_v0, %s4882_s14  ;;  %2542 = vrot.lane.b32.xlu1 %v5450_v52, %s4882_s14  ;;  %s4793_s14 = scalar_lea.vmem %s5897_s9, 1024 }
 0x502   : > { %p4794_p10 = scmp.ne.s32.totalorder %s5897_s9, %s4793_s14 }
 0x504   : > { %p4795_p3 = pnand %p4794_p10, %p5068_p5 }
 0x505   : > { %2804 = vrot.lane.b32.xlu0 %v4879_v0, %s4881_s11  ;;  %2806 = vrot.lane.b32.xlu1 %v4879_v0, %s4881_s11 }
 0x506   : > { %p4796_p7 = pneg %p4795_p3 }
 0x509   : > { %2808 = vrot.lane.b32.xlu0 %v4879_v0, %s4881_s11  ;;  %2810 = vrot.lane.b32.xlu1 %v4879_v0, %s4881_s11  ;;  %s5895_s11 = scalar_lea.hbm %s5951_s7, %s3887_s8 }
 0x51e   : > { %v1796_v59 = vpop.permute.xlu0 %1795 }
 0x51f   : > { %v1786_v60 = vpop.permute.xlu1 %1785  ;;  %v1825_v37 = vsel %vm714_vm0, %v1794_v56, %v1796_v59 }
 0x520   : > { %v1821_v61 = vsel %vm714_vm0, %v1784_v57, %v1786_v60  ;;  %v4636_v57 = vld [vmem:[#allocation8 + $0x38] sm:$0xff]  }
 0x521   : > { %1936 = vmatprep.subr.bf16.mxu1 %v1821_v61 }
 0x522   : > { %v1814_v36 = vpop.permute.xlu0 %1813  ;;  %1937 = vmatpush1.bf16.msra.mxu1 %v1820_v15 }
 0x523   : > { %1938 = vmatprep.subr.bf16.mxu1 %v1825_v37  ;;  %v1812_v39 = vpop.permute.xlu1 %1811 }
 0x524   : > { %v1831_v40 = vsel %vm714_vm0, %v5497_v12, %v1812_v39  ;;  %v1832_v9 = vsel %vm714_vm0, %v1812_v39, %v1814_v36 }
 0x525   : > { %1869 = vmatprep.subr.bf16.mxu0 %v1831_v40 }
 0x526   : > { %1870 = vmatpush1.bf16.msra.mxu0 %v1830_v41  ;;  %1939 = vmatpush1.bf16.msra.mxu1 %v1824_v42 }
 0x527   : > { %v1806_v14 = vpop.permute.xlu0 %1805  ;;  %v1816_v11 = vpop.permute.xlu1 %1815 }
 0x528   : > { %v1829_v4 = vsel %vm714_vm0, %v1804_v58, %v1806_v14  ;;  %v1833_v12 = vsel %vm714_vm0, %v1814_v36, %v1816_v11  ;;  %v4637_v14 = vld [vmem:[#allocation8] sm:$0xff]  }
 0x529   : > { %1940 = vmatprep.subr.bf16.mxu1 %v1829_v4  ;;  %3765 = vmatmul.mubr.msk.bf16.vlgmr.msra.gmra.mrb[40].mxu0 %vm1850_vm2, %v4633_v3 }
 0x52a   : > { %1941 = vmatpush1.bf16.msra.mxu1 %v1828_v5  ;;  %1905 = vmatprep.mubr.bf16.mxu0 %v4879_v0 }
 0x52b   : > { %v2032_v18 = vpop.permute.xlu0 %2031  ;;  %1942 = vmatprep.subr.bf16.mxu1 %v1833_v12  ;;  %v2034_v6 = vpop.permute.xlu1 %2033 }
 0x52c   : > { %v5641_v7 = vsel %vm1850_vm2, %v2032_v18, %v2034_v6 }
 0x52d   : > { %2114 = vmatprep.subr.bf16.mxu0 %v5641_v7 }
 0x52e   : > { %1943 = vmatpush1.bf16.msra.mxu1 %v1832_v9 }
 0x52f   : > { %v2036_v23 = vpop.permute.xlu0 %2035  ;;  %v5645_v21 = vpop.permute.xlu1 %2037 }
 0x530   : > { %v5648_v24 = vsel %vm1850_vm2, %v2034_v6, %v2036_v23  ;;  %v5652_v13 = vsel %vm1850_vm2, %v2036_v23, %v5645_v21  ;;  %v4641_v6 = vld [vmem:[#allocation8 + $0x40] sm:$0xff]  }
 0x531   : > { %3769 = vmatmul.mubr.msk.bf16.vlgmr.msra.gmra.mrb[40].mxu1 %vm1850_vm2, %v4633_v3  ;;  %2187 = vmatprep.subr.bf16.mxu1 %v5652_v13 }
 0x532   : > { %2188 = vmatpush1.bf16.msra.mxu1 %v5648_v24  ;;  %1978 = vmatprep.mubr.bf16.mxu1 %v4879_v0 }
 0x533   : > { %v4573_v16 = vpop.permute.xlu0 %4572  ;;  %v2042_v17 = vpop.permute.xlu1 %2041  ;;  %3766 = vmatmul.mubr.msk.bf16.gmra.mrb[44].mxu0 %vm1850_vm2, %v4634_v25 }
 0x534   : > { %v4574_v22 = vunpack.i.l.bf16 %v4573_v16  ;;  %1915 = vmatprep.mubr.bf16.mxu0 %v4879_v0  ;;  %v4575_v34 = vunpack.i.h.bf16 %v4573_v16 }
 0x536   : > { %v2070_v35 = vsel %vm1850_vm2, %v4574_v22, %v2032_v18  ;;  %v2074_v54 = vsel %vm1850_vm2, %v4575_v34, %v2042_v17 }
 0x537   : > { %v2044_v43 = vpop.permute.xlu0 %2043  ;;  %2115 = vmatpush1.bf16.msra.mxu0 %v2070_v35  ;;  %v2046_v44 = vpop.permute.xlu1 %2045 }
 0x538   : > { %v5662_v45 = vsel %vm1850_vm2, %v2042_v17, %v2044_v43  ;;  %v5676_v47 = vsel %vm1850_vm2, %v2044_v43, %v2046_v44 }
 0x539   : > { %3770 = vmatmul.mubr.msk.bf16.gmra.mrb[44].mxu1 %vm1850_vm2, %v4634_v25  ;;  %2116 = vmatprep.subr.bf16.mxu0 %v5662_v45 }
 0x53a   : > { %1988 = vmatprep.mubr.bf16.mxu1 %v4879_v0 }
 0x53b   : > { %v5668_v62 = vpop.permute.xlu0 %2047  ;;  %2117 = vmatpush1.bf16.msra.mxu0 %v2074_v54  ;;  %v2052_v32 = vpop.permute.xlu1 %2051 }
 0x53c   : > { %v5672_v33 = vsel %vm1850_vm2, %v2046_v44, %v5668_v62  ;;  %3767 = vmatmul.mubr.msk.bf16.gmra.mrb[48].mxu0 %vm1850_vm2, %v4635_v55  ;;  %v4642_v44 = vld [vmem:[#allocation8 + $0x48] sm:$0xff]  }
 0x53d   : > { %2189 = vmatprep.subr.bf16.mxu1 %v5672_v33  ;;  %1925 = vmatprep.mubr.bf16.mxu0 %v4879_v0 }
 0x53e   : > { %2190 = vmatpush1.bf16.msra.mxu1 %v5676_v47 }
 0x53f   : > { %v2054_v48 = vpop.permute.xlu0 %2053  ;;  %v2056_v49 = vpop.permute.xlu1 %2055 }
 0x540   : > { %v5682_v56 = vsel %vm1850_vm2, %v2052_v32, %v2054_v48  ;;  %v5702_v37 = vsel %vm1850_vm2, %v2054_v48, %v2056_v49 }
 0x541   : > { %3771 = vmatmul.mubr.msk.bf16.gmra.mrb[48].mxu1 %vm1850_vm2, %v4635_v55  ;;  %2118 = vmatprep.subr.bf16.mxu0 %v5682_v56 }
 0x542   : > { %1998 = vmatprep.mubr.bf16.mxu1 %v4879_v0 }
 0x543   : > { %v2062_v58 = vpop.permute.xlu0 %2061  ;;  %v2050_v59 = vpop.permute.xlu1 %2049 }
 0x544   : > { %v2078_v60 = vsel %vm1850_vm2, %v2050_v59, %v2052_v32  ;;  %3768 = vmatmul.mubr.msk.bf16.gmra.mrb[52].mxu0 %vm1850_vm2, %v4636_v57 }
 0x545   : > { %2119 = vmatpush1.bf16.msra.mxu0 %v2078_v60  ;;  %2146 = vmatprep.mubr.bf16.mxu0 %v4879_v0 }
 0x547   : > { %v5690_v61 = vpop.permute.xlu0 %2057  ;;  %v2064_v63 = vpop.permute.xlu1 %2063 }
 0x548   : > { %v5693_v15 = vsel %vm1850_vm2, %v2062_v58, %v2064_v63  ;;  %v5697_v36 = vsel %vm1850_vm2, %v2056_v49, %v5690_v61 }
 0x549   : > { %3772 = vmatmul.mubr.msk.bf16.gmra.mrb[52].mxu1 %vm1850_vm2, %v4636_v57  ;;  %2120 = vmatprep.subr.bf16.mxu0 %v5693_v15 }
 0x54a   : > { %2191 = vmatprep.subr.bf16.mxu1 %v5697_v36  ;;  %2219 = vmatprep.mubr.bf16.mxu1 %v4879_v0 }
 0x54b   : > { %2192 = vmatpush1.bf16.msra.mxu1 %v5702_v37  ;;  %v2066_v39 = vpop.permute.xlu0 %2065  ;;  %v5707_v40 = vpop.permute.xlu1 %2067 }
 0x54c   : > { %v5710_v41 = vsel %vm1850_vm2, %v2064_v63, %v2066_v39  ;;  %v5714_v42 = vsel %vm1850_vm2, %v2066_v39, %v5707_v40 }
 0x54d   : > { %2193 = vmatprep.subr.bf16.mxu1 %v5714_v42 }
 0x54f   : > { %2194 = vmatpush1.bf16.msra.mxu1 %v5710_v41  ;;  %v2060_v11 = vpop.permute.xlu0 %2059  ;;  %v5718_v3 = vpop.permute.xlu1 %2514 }
 0x550   : > { %v2082_v4 = vsel %vm1850_vm2, %v2060_v11, %v2062_v58  ;;  %2374 = vmatprep.subr.bf16.mxu1 %v5540_v31  ;;  %v4638_v31 = vld [vmem:[#allocation8 + $0x8] sm:$0xff]  }
 0x551   : > { %2121 = vmatpush1.bf16.msra.mxu0 %v2082_v4  ;;  %v4644_v4 = vld [vmem:[#allocation8 + $0x58] sm:$0xff]  }
 0x552   : > { %3781 = vmatmul.mubr.msk.bf16.vlgmr.msra.gmra.mrb[40].mxu1 %vm1850_vm2, %v4637_v14  ;;  %2301 = vmatprep.subr.bf16.mxu0 %v5460_v27 }
 0x553   : > { %2375 = vmatpush1.bf16.msra.mxu1 %v5519_v38  ;;  %v2517_v5 = vpop.permute.xlu0 %2516  ;;  %v2519_v12 = vpop.permute.xlu1 %2518  ;;  %2229 = vmatprep.mubr.bf16.mxu1 %v4879_v0 }
 0x554   : > { %2376 = vmatprep.subr.bf16.mxu1 %v5538_v29  ;;  %3777 = vmatmul.mubr.msk.bf16.vlgmr.msra.gmra.mrb[40].mxu0 %vm1850_vm2, %v4637_v14  ;;  %v2555_v16 = vsel %vm812_vm1, %v2517_v5, %v2519_v12  ;;  %v4643_v14 = vld [vmem:[#allocation8 + $0x50] sm:$0xff]  }
 0x555   : > { %2302 = vmatpush1.bf16.msra.mxu0 %v5444_v30  ;;  %2156 = vmatprep.mubr.bf16.mxu0 %v4879_v0 }
 0x556   : > { %2303 = vmatprep.subr.bf16.mxu0 %v5458_v26 }
 0x557   : > { %2377 = vmatpush1.bf16.msra.mxu1 %v5517_v28  ;;  %v4578_v27 = vpop.permute.xlu0 %4577  ;;  %v2513_v18 = vpop.permute.xlu1 %2512 }
 0x558   : > { %2378 = vmatprep.subr.bf16.mxu1 %v5552_v51  ;;  %v4579_v38 = vunpack.i.l.bf16 %v4578_v27  ;;  %v4580_v9 = vunpack.i.h.bf16 %v4578_v27  ;;  %v2553_v22 = vsel %vm812_vm1, %v2513_v18, %v5718_v3  ;;  %v4658_v18 = vld [vmem:[#allocation9] sm:$0xff]  }
 0x559   : > { %2304 = vmatpush1.bf16.msra.mxu0 %v5442_v46  ;;  %v4639_v46 = vld [vmem:[#allocation8 + $0x10] sm:$0xff]  }
 0x55a   : > { %3782 = vmatmul.mubr.msk.bf16.gmra.mrb[44].mxu1 %vm1850_vm2, %v4638_v31  ;;  %2305 = vmatprep.subr.bf16.mxu0 %v5468_v2  ;;  %v2556_v2 = vsel %vm812_vm1, %v2519_v12, %v4579_v38  ;;  %v4659_v38 = vld [vmem:[#allocation9 + $0x48] sm:$0xff]  }
 0x55b   : > { %2379 = vmatpush1.bf16.msra.mxu1 %v5527_v10  ;;  %v2525_v30 = vpop.permute.xlu0 %2524  ;;  %v2527_v29 = vpop.permute.xlu1 %2526  ;;  %2239 = vmatprep.mubr.bf16.mxu1 %v4879_v0  ;;  %v2554_v10 = vsel %vm812_vm1, %v5718_v3, %v2517_v5 }
 0x55c   : > { %2380 = vmatprep.subr.bf16.mxu1 %v5550_v50  ;;  %3778 = vmatmul.mubr.msk.bf16.gmra.mrb[44].mxu0 %vm1850_vm2, %v4638_v31  ;;  %v2558_v34 = vsel %vm812_vm1, %v2525_v30, %v2527_v29  ;;  %v4646_v31 = vld [vmem:[#allocation8 + $0x68] sm:$0xff]  }
 0x55d   : > { %2306 = vmatpush1.bf16.msra.mxu0 %v5452_v53  ;;  %2166 = vmatprep.mubr.bf16.mxu0 %v4879_v0 }
 0x55e   : > { %2307 = vmatprep.subr.bf16.mxu0 %v5466_v1 }
 0x55f   : > { %2381 = vmatpush1.bf16.msra.mxu1 %v5525_v8  ;;  %v2529_v26 = vpop.permute.xlu0 %2528  ;;  %v2523_v28 = vpop.permute.xlu1 %2522  ;;  %v4640_v8 = vld [vmem:[#allocation8 + $0x18] sm:$0xff]  }
 0x560   : > { %2670 = vmatprep.subr.bf16.mxu1 %v2556_v2  ;;  %v2560_v17 = vsel %vm812_vm1, %v2529_v26, %v4580_v9  ;;  %v2559_v35 = vsel %vm812_vm1, %v2527_v29, %v2529_v26  ;;  %v2557_v32 = vsel %vm812_vm1, %v2523_v28, %v2525_v30  ;;  %v4660_v30 = vld [vmem:[#allocation9 + $0x8] sm:$0xff]   ;;  %v4661_v29 = vld [vmem:[#allocation9 + $0x50] sm:$0xff]   ;;  %v4663_v2 = vld [vmem:[#allocation9 + $0x58] sm:$0xff]  }
 0x561   : > { %2308 = vmatpush1.bf16.msra.mxu0 %v5450_v52  ;;  %v4662_v26 = vld [vmem:[#allocation9 + $0x10] sm:$0xff]   ;;  %v4664_v28 = vld [vmem:[#allocation9 + $0x18] sm:$0xff]  }
 0x562   : > { %3783 = vmatmul.mubr.msk.bf16.gmra.mrb[48].mxu1 %vm1850_vm2, %v4639_v46  ;;  %2597 = vmatprep.subr.bf16.mxu0 %v2554_v10  ;;  %v4665_v10 = vld [vmem:[#allocation9 + $0x60] sm:$0xff]   ;;  %v4671_v9 = vld [vmem:[#allocation9 + $0x78] sm:$0xff]  }
 0x563   : > { %v2535_v53 = vpop.permute.xlu0 %2534  ;;  %2249 = vmatprep.mubr.bf16.mxu1 %v4879_v0  ;;  %v2537_v1 = vpop.permute.xlu1 %2536 }
 0x564   : > { %3779 = vmatmul.mubr.msk.bf16.gmra.mrb[48].mxu0 %vm1850_vm2, %v4639_v46  ;;  %v2562_v48 = vsel %vm812_vm1, %v2535_v53, %v2537_v1  ;;  %v4654_v46 = vld [vmem:[%s5949_s5 + $0x8] sm:$0xff]  }
 0x565   : > { %2176 = vmatprep.mubr.bf16.mxu0 %v4879_v0 }
 0x567   : > { %v2533_v50 = vpop.permute.xlu0 %2532  ;;  %v2541_v51 = vpop.permute.xlu1 %2540 }
 0x568   : > { %v2561_v58 = vsel %vm812_vm1, %v2533_v50, %v2535_v53  ;;  %v4655_v53 = vld [vmem:[%s5949_s5 + $0x10] sm:$0xff]   ;;  %v4668_v50 = vld [vmem:[#allocation9 + $0x28] sm:$0xff]  }
 0x56a   : > { %3784 = vmatmul.mubr.msk.bf16.gmra.mrb[52].mxu1 %vm1850_vm2, %v4640_v8 }
 0x56b   : > { %v2547_v52 = vpop.permute.xlu0 %2546  ;;  %2406 = vmatprep.mubr.bf16.mxu1 %v4879_v0  ;;  %v2545_v25 = vpop.permute.xlu1 %2544 }
 0x56c   : > { %3780 = vmatmul.mubr.msk.bf16.gmra.mrb[52].mxu0 %vm1850_vm2, %v4640_v8  ;;  %v2566_v63 = vsel %vm812_vm1, %v2545_v25, %v2547_v52  ;;  %v4667_v8 = vld [vmem:[#allocation9 + $0x68] sm:$0xff]  }
 0x56d   : > { %2333 = vmatprep.mubr.bf16.mxu0 %v4879_v0 }
 0x56f   : > { %v2539_v23 = vpop.permute.xlu0 %2538  ;;  %v2549_v54 = vpop.permute.xlu1 %2548 }
 0x570   : > { %v2564_v55 = vsel %vm812_vm1, %v2539_v23, %v2541_v51  ;;  %v2563_v49 = vsel %vm812_vm1, %v2537_v1, %v2539_v23  ;;  %v2567_v39 = vsel %vm812_vm1, %v2547_v52, %v2549_v54  ;;  %v4666_v1 = vld [vmem:[#allocation9 + $0x20] sm:$0xff]   ;;  %v4669_v51 = vld [vmem:[#allocation9 + $0x70] sm:$0xff]   ;;  %v4656_v52 = vld [vmem:[%s5949_s5 + $0x18] sm:$0xff]  }
 0x571   : > { %v4672_v23 = vld [vmem:[#allocation9 + $0x38] sm:$0xff]  }
 0x572   : > { %3793 = vmatmul.mubr.msk.bf16.vlgmr.msra.gmra.mrb[40].mxu1 %vm1850_vm2, %v4641_v6 }
 0x573   : > { %2671 = vmatpush1.bf16.msra.mxu1 %v2555_v16  ;;  %2416 = vmatprep.mubr.bf16.mxu1 %v4879_v0  ;;  %v2551_v43 = vpop.permute.xlu0 %2550  ;;  %v2543_v60 = vpop.permute.xlu1 %2542 }
 0x574   : > { %2672 = vmatprep.subr.bf16.mxu1 %v2560_v17  ;;  %3789 = vmatmul.mubr.msk.bf16.vlgmr.msra.gmra.mrb[40].mxu0 %vm1850_vm2, %v4641_v6  ;;  %v2568_v57 = vsel %vm812_vm1, %v2549_v54, %v2551_v43  ;;  %v2565_v3 = vsel %vm812_vm1, %v2543_v60, %v2545_v25  ;;  %v4670_v6 = vld [vmem:[#allocation9 + $0x30] sm:$0xff]  }
 0x575   : > { %2598 = vmatpush1.bf16.msra.mxu0 %v2553_v22  ;;  %2343 = vmatprep.mubr.bf16.mxu0 %v4879_v0 }
 0x576   : > { %2599 = vmatprep.subr.bf16.mxu0 %v2558_v34 }
 0x577   : > { %2673 = vmatpush1.bf16.msra.mxu1 %v2559_v35  ;;  %v2805_v59 = vpop.permute.xlu0 %2804  ;;  %v2807_v5 = vpop.permute.xlu1 %2806 }
 0x578   : > { %2674 = vmatprep.subr.bf16.mxu1 %v2564_v55  ;;  %v2812_v11 = vsel %vm1850_vm2, %v5645_v21, %v2805_v59  ;;  %v4645_v21 = vld [vmem:[#allocation8 + $0x60] sm:$0xff]  }
 0x579   : > { %2600 = vmatpush1.bf16.msra.mxu0 %v2557_v32 }
 0x57a   : > { %3794 = vmatmul.mubr.msk.bf16.gmra.mrb[44].mxu1 %vm1850_vm2, %v4642_v44  ;;  %2601 = vmatprep.subr.bf16.mxu0 %v2562_v48 }
 0x57b   : > { %2675 = vmatpush1.bf16.msra.mxu1 %v2563_v49  ;;  %2426 = vmatprep.mubr.bf16.mxu1 %v4879_v0  ;;  %v2809_v12 = vpop.permute.xlu0 %2808  ;;  %v2811_v27 = vpop.permute.xlu1 %2810 }
 0x57c   : > { %2676 = vmatprep.subr.bf16.mxu1 %v2568_v57  ;;  %3790 = vmatmul.mubr.msk.bf16.gmra.mrb[44].mxu0 %vm1850_vm2, %v4642_v44 }
 0x57d   : > { %2602 = vmatpush1.bf16.msra.mxu0 %v2561_v58  ;;  %2353 = vmatprep.mubr.bf16.mxu0 %v4879_v0 }
 0x57e   : > { %2603 = vmatprep.subr.bf16.mxu0 %v2566_v63 }
 0x57f   : > { %2677 = vmatpush1.bf16.msra.mxu1 %v2567_v39 }
 0x580   : > { %2905 = vmatprep.subr.bf16.mxu1 %v2812_v11 }
 0x581   : > { %2604 = vmatpush1.bf16.msra.mxu0 %v2565_v3 }
 0x582   : > { %3795 = vmatmul.mubr.msk.bf16.gmra.mrb[48].mxu1 %vm1850_vm2, %v4643_v14  ;;  %2832 = vmatprep.subr.bf16.mxu0 %v5648_v24  ;;  %v2813_v24 = vsel %vm1850_vm2, %v5668_v62, %v2807_v5  ;;  %v4673_v62 = vld [vmem:[%s5122_s21 + $0x4] ss:$16 sps:$4 sm:$0xff]  }
 0x583   : > { %2436 = vmatprep.mubr.bf16.mxu1 %v4879_v0 }
 0x584   : > { %3791 = vmatmul.mubr.msk.bf16.gmra.mrb[48].mxu0 %vm1850_vm2, %v4643_v14 }
 0x585   : > { %2363 = vmatprep.mubr.bf16.mxu0 %v4879_v0 }
 0x58a   : > { %3796 = vmatmul.mubr.msk.bf16.gmra.mrb[52].mxu1 %vm1850_vm2, %v4644_v4 }
 0x58b   : > { %2702 = vmatprep.mubr.bf16.mxu1 %v4879_v0 }
 0x58c   : > { %3792 = vmatmul.mubr.msk.bf16.gmra.mrb[52].mxu0 %vm1850_vm2, %v4644_v4 }
 0x58d   : > { %2629 = vmatprep.mubr.bf16.mxu0 %v4879_v0 }
 0x592   : > { %3805 = vmatmul.mubr.msk.bf16.vlgmr.msra.gmra.mrb[40].mxu1 %vm1850_vm2, %v4645_v21 }
 0x593   : > { %2906 = vmatpush1.bf16.msra.mxu1 %v5652_v13  ;;  %2712 = vmatprep.mubr.bf16.mxu1 %v4879_v0  ;;  %v2814_v13 = vsel %vm1850_vm2, %v5690_v61, %v2809_v12  ;;  %v4675_v61 = vld [vmem:[%s5122_s21] ss:$16 sps:$4 sm:$0xff]  }
 0x594   : > { %2907 = vmatprep.subr.bf16.mxu1 %v2813_v24  ;;  %3801 = vmatmul.mubr.msk.bf16.vlgmr.msra.gmra.mrb[40].mxu0 %vm1850_vm2, %v4645_v21 }
 0x595   : > { %2833 = vmatpush1.bf16.msra.mxu0 %v5641_v7  ;;  %2639 = vmatprep.mubr.bf16.mxu0 %v4879_v0  ;;  %v2815_v7 = vsel %vm1850_vm2, %v5707_v40, %v2811_v27  ;;  %v4678_v40 = vld [vmem:[%s5122_s21 + $0x20] ss:$16 sps:$4 sm:$0xff]  }
 0x596   : > { %2834 = vmatprep.subr.bf16.mxu0 %v5676_v47  ;;  %v4674_v47 = vld [vmem:[%s5122_s21 + $0x8] ss:$16 sps:$4 sm:$0xff]  }
 0x597   : > { %2908 = vmatpush1.bf16.msra.mxu1 %v5672_v33  ;;  %v4648_v33 = vld [vmem:[#allocation8 + $0x78] sm:$0xff]  }
 0x598   : > { %2909 = vmatprep.subr.bf16.mxu1 %v2814_v13 }
 0x599   : > { %2835 = vmatpush1.bf16.msra.mxu0 %v5662_v45  ;;  %v4647_v45 = vld [vmem:[#allocation8 + $0x70] sm:$0xff]  }
 0x59a   : > { %3806 = vmatmul.mubr.msk.bf16.gmra.mrb[44].mxu1 %vm1850_vm2, %v4646_v31  ;;  %2836 = vmatprep.subr.bf16.mxu0 %v5702_v37  ;;  %v4677_v37 = vld [vmem:[%s5122_s21 + $0x28] ss:$16 sps:$4 sm:$0xff]  }
 0x59b   : > { %2910 = vmatpush1.bf16.msra.mxu1 %v5697_v36  ;;  %2722 = vmatprep.mubr.bf16.mxu1 %v4879_v0  ;;  %v4676_v36 = vld [vmem:[%s5122_s21 + $0x24] ss:$16 sps:$4 sm:$0xff]   ;;  %s4883_s21 = smov [#allocation11]  }
 0x59c   : > { %2911 = vmatprep.subr.bf16.mxu1 %v2815_v7  ;;  %3802 = vmatmul.mubr.msk.bf16.gmra.mrb[44].mxu0 %vm1850_vm2, %v4646_v31  ;;  %s4797_s16 = sshll.u32 %s4883_s21, 4  ;;  %s4798_s16 = int_to_ptr.vmem [resolvable:$false] %s4797_s16 }
 0x59d   : > { %2837 = vmatpush1.bf16.msra.mxu0 %v5682_v56  ;;  %2649 = vmatprep.mubr.bf16.mxu0 %v4879_v0  ;;  %v4657_v56 = vld [vmem:[#allocation9 + $0x40] sm:$0xff]   ;;  %s4799_s22 = scalar_lea.vmem %s4798_s16, 2048  ;;  %p4800_p12 = scmp.lt.s32.totalorder %s5897_s9, %s4798_s16 }
 0x59e   : > { %2838 = vmatprep.subr.bf16.mxu0 %v5710_v41  ;;  %v4652_v41 = vld [vmem:[#allocation8 + $0x98] sm:$0xff]   ;;  %p4801_p2 = scmp.lt.s32.totalorder %s4799_s22, %s4793_s14 }
 0x59f   : > { %2912 = vmatpush1.bf16.msra.mxu1 %v5714_v42  ;;  %v4653_v42 = vld [vmem:[%s5949_s5] sm:$0xff]  }
 0x5a0   : > { %3115 = vmatprep.subr.bf16.mxu1 %v5420_v19  ;;  %v4649_v19 = vld [vmem:[#allocation8 + $0x80] sm:$0xff]   ;;  %p4802_p1 = por %p4801_p2, %p4800_p12 }
 0x5a1   : > { %2839 = vmatpush1.bf16.msra.mxu0 %v5693_v15  ;;  %v4650_v15 = vld [vmem:[#allocation8 + $0x88] sm:$0xff]  }
 0x5a2   : > { %3807 = vmatmul.mubr.msk.bf16.gmra.mrb[48].mxu1 %vm1850_vm2, %v4647_v45  ;;  %3042 = vmatprep.subr.bf16.mxu0 %v4673_v62  ;;  %p4803_p4 = pnand %p4802_p1, %p4796_p7 }
 0x5a3   : > { %2732 = vmatprep.mubr.bf16.mxu1 %v4879_v0 }
 0x5a4   : > { %3803 = vmatmul.mubr.msk.bf16.gmra.mrb[48].mxu0 %vm1850_vm2, %v4647_v45 }
 0x5a5   : > { %2659 = vmatprep.mubr.bf16.mxu0 %v4879_v0 }
 0x5aa   : > { %3808 = vmatmul.mubr.msk.bf16.gmra.mrb[52].mxu1 %vm1850_vm2, %v4648_v33 }
 0x5ab   : > { %2937 = vmatprep.mubr.bf16.mxu1 %v4879_v0 }
 0x5ac   : > { %3804 = vmatmul.mubr.msk.bf16.gmra.mrb[52].mxu0 %vm1850_vm2, %v4648_v33 }
 0x5ad   : > { %2864 = vmatprep.mubr.bf16.mxu0 %v4879_v0 }
 0x5b2   : > { %3817 = vmatmul.mubr.msk.bf16.vlgmr.msra.gmra.mrb[40].mxu1 %vm1850_vm2, %v4649_v19 }
 0x5b3   : > { %2947 = vmatprep.mubr.bf16.mxu1 %v4879_v0  ;;  %3116 = vmatpush1.bf16.msra.mxu1 %v4674_v47 }
 0x5b4   : > { %3813 = vmatmul.mubr.msk.bf16.vlgmr.msra.gmra.mrb[40].mxu0 %vm1850_vm2, %v4649_v19  ;;  %3117 = vmatprep.subr.bf16.mxu1 %v5427_v20  ;;  %v4651_v20 = vld [vmem:[#allocation8 + $0x90] sm:$0xff]  }
 0x5b5   : > { %3043 = vmatpush1.bf16.msra.mxu0 %v4675_v61  ;;  %2874 = vmatprep.mubr.bf16.mxu0 %v4879_v0 }
 0x5b6   : > { %3044 = vmatprep.subr.bf16.mxu0 %v4676_v36 }
 0x5b7   : > { %3118 = vmatpush1.bf16.msra.mxu1 %v4677_v37 }
 0x5b8   : > { %4032 = vmatprep.subr.bf16.mxu1 %v4657_v56 }
 0x5b9   : > { %3045 = vmatpush1.bf16.msra.mxu0 %v4678_v40 }
 0x5ba   : > { %3818 = vmatmul.mubr.msk.bf16.gmra.mrb[44].mxu1 %vm1850_vm2, %v4650_v15  ;;  %3992 = vmatprep.subr.bf16.mxu0 %v4657_v56 }
 0x5bb   : > { %2957 = vmatprep.mubr.bf16.mxu1 %v4879_v0 }
 0x5bc   : > { %3814 = vmatmul.mubr.msk.bf16.gmra.mrb[44].mxu0 %vm1850_vm2, %v4650_v15 }
 0x5bd   : > { %2884 = vmatprep.mubr.bf16.mxu0 %v4879_v0 }
 0x5c2   : > { %3819 = vmatmul.mubr.msk.bf16.gmra.mrb[48].mxu1 %vm1850_vm2, %v4651_v20 }
 0x5c3   : > { %2967 = vmatprep.mubr.bf16.mxu1 %v4879_v0 }
 0x5c4   : > { %3815 = vmatmul.mubr.msk.bf16.gmra.mrb[48].mxu0 %vm1850_vm2, %v4651_v20 }
 0x5c5   : > { %2894 = vmatprep.mubr.bf16.mxu0 %v4879_v0 }
 0x5ca   : > { %3820 = vmatmul.mubr.msk.bf16.gmra.mrb[52].mxu1 %vm1850_vm2, %v4652_v41 }
 0x5cb   : > { %3147 = vmatprep.mubr.bf16.mxu1 %v4879_v0 }
 0x5cc   : > { %3816 = vmatmul.mubr.msk.bf16.gmra.mrb[52].mxu0 %vm1850_vm2, %v4652_v41 }
 0x5cd   : > { %3074 = vmatprep.mubr.bf16.mxu0 %v4879_v0 }
 0x5d2   : > { %3829 = vmatmul.mubr.msk.bf16.vlgmr.msra.gmra.mrb[40].mxu1 %vm714_vm0, %v4653_v42 }
 0x5d3   : > { %3157 = vmatprep.mubr.bf16.mxu1 %v4879_v0  ;;  %4033 = vmatpush3.bf16.msra.mxu1 %v4658_v18 }
 0x5d4   : > { %3825 = vmatmul.mubr.msk.bf16.vlgmr.msra.gmra.mrb[40].mxu0 %vm714_vm0, %v4653_v42  ;;  %4034 = vmatprep.subr.bf16.mxu1 %v4659_v38 }
 0x5d5   : > { %3084 = vmatprep.mubr.bf16.mxu0 %v4879_v0  ;;  %3993 = vmatpush3.bf16.msra.mxu0 %v4658_v18 }
 0x5d6   : > { %3994 = vmatprep.subr.bf16.mxu0 %v4659_v38 }
 0x5d7   : > { %4035 = vmatpush3.bf16.msra.mxu1 %v4660_v30 }
 0x5d8   : > { %4036 = vmatprep.subr.bf16.mxu1 %v4661_v29 }
 0x5d9   : > { %3995 = vmatpush3.bf16.msra.mxu0 %v4660_v30 }
 0x5da   : > { %3830 = vmatmul.mubr.msk.bf16.gmra.mrb[44].mxu1 %vm714_vm0, %v4654_v46  ;;  %3996 = vmatprep.subr.bf16.mxu0 %v4661_v29 }
 0x5db   : > { %3167 = vmatprep.mubr.bf16.mxu1 %v4879_v0  ;;  %4037 = vmatpush3.bf16.msra.mxu1 %v4662_v26 }
 0x5dc   : > { %3826 = vmatmul.mubr.msk.bf16.gmra.mrb[44].mxu0 %vm714_vm0, %v4654_v46  ;;  %4038 = vmatprep.subr.bf16.mxu1 %v4663_v2 }
 0x5dd   : > { %3094 = vmatprep.mubr.bf16.mxu0 %v4879_v0  ;;  %3997 = vmatpush3.bf16.msra.mxu0 %v4662_v26 }
 0x5de   : > { %3998 = vmatprep.subr.bf16.mxu0 %v4663_v2 }
 0x5df   : > { %4039 = vmatpush3.bf16.msra.mxu1 %v4664_v28 }
 0x5e0   : > { %4040 = vmatprep.subr.bf16.mxu1 %v4665_v10 }
 0x5e1   : > { %3999 = vmatpush3.bf16.msra.mxu0 %v4664_v28 }
 0x5e2   : > { %3831 = vmatmul.mubr.msk.bf16.gmra.mrb[48].mxu1 %vm714_vm0, %v4655_v53  ;;  %4000 = vmatprep.subr.bf16.mxu0 %v4665_v10 }
 0x5e3   : > { %3177 = vmatprep.mubr.bf16.mxu1 %v4879_v0  ;;  %4041 = vmatpush3.bf16.msra.mxu1 %v4666_v1 }
 0x5e4   : > { %3827 = vmatmul.mubr.msk.bf16.gmra.mrb[48].mxu0 %vm714_vm0, %v4655_v53  ;;  %4042 = vmatprep.subr.bf16.mxu1 %v4667_v8 }
 0x5e5   : > { %3104 = vmatprep.mubr.bf16.mxu0 %v4879_v0  ;;  %4001 = vmatpush3.bf16.msra.mxu0 %v4666_v1 }
 0x5e6   : > { %4002 = vmatprep.subr.bf16.mxu0 %v4667_v8 }
 0x5e7   : > { %4043 = vmatpush3.bf16.msra.mxu1 %v4668_v50 }
 0x5e8   : > { %4044 = vmatprep.subr.bf16.mxu1 %v4669_v51 }
 0x5e9   : > { %4003 = vmatpush3.bf16.msra.mxu0 %v4668_v50 }
 0x5ea   : > { %3832 = vmatmul.mubr.msk.bf16.gmra.mrb[52].mxu1 %vm714_vm0, %v4656_v52  ;;  %4004 = vmatprep.subr.bf16.mxu0 %v4669_v51 }
 0x5eb   : > { %4045 = vmatpush3.bf16.msra.mxu1 %v4670_v6 }
 0x5ec   : > { %3828 = vmatmul.mubr.msk.bf16.gmra.mrb[52].mxu0 %vm714_vm0, %v4656_v52  ;;  %4046 = vmatprep.subr.bf16.mxu1 %v4671_v9 }
 0x5ed   : > { %4005 = vmatpush3.bf16.msra.mxu0 %v4670_v6 }
 0x5ee   : > { %4006 = vmatprep.subr.bf16.mxu0 %v4671_v9 }
 0x5ef   : > { %4047 = vmatpush3.bf16.msra.mxu1 %v4672_v23 }
 0x5f1   : > { %4007 = vmatpush3.bf16.msra.mxu0 %v4672_v23 }
 0x6a5   : > { %v3149_v0 = vpop.f32.mrb[40].mxu1 }
 0x6a6   : > { %v3151_v25 = vpop.f32.mrb[41].mxu1 }
 0x6a7   : > { %v3153_v16 = vpop.f32.mrb[42].mxu1  ;;  %v3076_v17 = vpop.f32.mrb[40].mxu0 }
 0x6a8   : > { %v3222_v22 = vpack.c.bf16 %v3153_v16, %v3149_v0  ;;  %v3155_v34 = vpop.f32.mrb[43].mxu1  ;;  %v3078_v35 = vpop.f32.mrb[41].mxu0 }
 0x6a9   : > { %v3223_v43 = vpack.c.bf16 %v3155_v34, %v3151_v25  ;;  %v3080_v44 = vpop.f32.mrb[42].mxu0 }
 0x6aa   : > { %v3220_v54 = vpack.c.bf16 %v3080_v44, %v3076_v17  ;;  %v3082_v55 = vpop.f32.mrb[43].mxu0 }
 0x6ab   : > { %v3221_v32 = vpack.c.bf16 %v3082_v55, %v3078_v35  ;;  %3477 = vmatprep.mubr.bf16.mxu1 %v3223_v43 }
 0x6ac   : > { %3478 = vmatmul.mubr.bf16.vlgmr.msra.gmra.mrb[56].mxu1 %v3222_v22 }
 0x6ad   : > { %v3159_v48 = vpop.f32.mrb[44].mxu1  ;;  %3364 = vmatprep.mubr.bf16.mxu0 %v3221_v32 }
 0x6ae   : > { %v3161_v49 = vpop.f32.mrb[45].mxu1  ;;  %3365 = vmatmul.mubr.bf16.vlgmr.msra.gmra.mrb[56].mxu0 %v3220_v54 }
 0x6af   : > { %v3163_v57 = vpop.f32.mrb[46].mxu1  ;;  %v3086_v58 = vpop.f32.mrb[44].mxu0 }
 0x6b0   : > { %v3226_v59 = vpack.c.bf16 %v3163_v57, %v3159_v48  ;;  %v3165_v60 = vpop.f32.mrb[47].mxu1  ;;  %v3088_v63 = vpop.f32.mrb[45].mxu0 }
 0x6b1   : > { %v3227_v39 = vpack.c.bf16 %v3165_v60, %v3161_v49  ;;  %v3090_v14 = vpop.f32.mrb[46].mxu0 }
 0x6b2   : > { %v3224_v11 = vpack.c.bf16 %v3090_v14, %v3086_v58  ;;  %v3092_v3 = vpop.f32.mrb[47].mxu0 }
 0x6b3   : > { %v3225_v4 = vpack.c.bf16 %v3092_v3, %v3088_v63  ;;  %3485 = vmatprep.mubr.bf16.mxu1 %v3227_v39 }
 0x6b4   : > { %3486 = vmatmul.mubr.bf16.gmra.mrb[60].mxu1 %v3226_v59 }
 0x6b5   : > { %v3169_v21 = vpop.f32.mrb[48].mxu1  ;;  %3372 = vmatprep.mubr.bf16.mxu0 %v3225_v4 }
 0x6b6   : > { %v3171_v5 = vpop.f32.mrb[49].mxu1  ;;  %3373 = vmatmul.mubr.bf16.gmra.mrb[60].mxu0 %v3224_v11 }
 0x6b7   : > { %v3173_v24 = vpop.f32.mrb[50].mxu1  ;;  %v3096_v12 = vpop.f32.mrb[48].mxu0 }
 0x6b8   : > { %v3230_v31 = vpack.c.bf16 %v3173_v24, %v3169_v21  ;;  %v3175_v13 = vpop.f32.mrb[51].mxu1  ;;  %v3098_v27 = vpop.f32.mrb[49].mxu0 }
 0x6b9   : > { %v3231_v7 = vpack.c.bf16 %v3175_v13, %v3171_v5  ;;  %v3100_v45 = vpop.f32.mrb[50].mxu0 }
 0x6ba   : > { %v3228_v62 = vpack.c.bf16 %v3100_v45, %v3096_v12  ;;  %v3102_v33 = vpop.f32.mrb[51].mxu0 }
 0x6bb   : > { %v3229_v19 = vpack.c.bf16 %v3102_v33, %v3098_v27  ;;  %3493 = vmatprep.mubr.bf16.mxu1 %v3231_v7 }
 0x6bc   : > { %3494 = vmatmul.mubr.bf16.gmra.mrb[64].mxu1 %v3230_v31 }
 0x6bd   : > { %v3179_v47 = vpop.f32.mrb[52].mxu1  ;;  %3380 = vmatprep.mubr.bf16.mxu0 %v3229_v19 }
 0x6be   : > { %v3181_v56 = vpop.f32.mrb[53].mxu1  ;;  %3381 = vmatmul.mubr.bf16.gmra.mrb[64].mxu0 %v3228_v62 }
 0x6bf   : > { %v3183_v61 = vpop.f32.mrb[54].mxu1  ;;  %v3106_v15 = vpop.f32.mrb[52].mxu0 }
 0x6c0   : > { %v3234_v36 = vpack.c.bf16 %v3183_v61, %v3179_v47  ;;  %v3185_v37 = vpop.f32.mrb[55].mxu1  ;;  %v3108_v40 = vpop.f32.mrb[53].mxu0 }
 0x6c1   : > { %v3235_v20 = vpack.c.bf16 %v3185_v37, %v3181_v56  ;;  %v3110_v41 = vpop.f32.mrb[54].mxu0 }
 0x6c2   : > { %v3232_v42 = vpack.c.bf16 %v3110_v41, %v3106_v15  ;;  %v3112_v18 = vpop.f32.mrb[55].mxu0 }
 0x6c3   : > { %v3233_v38 = vpack.c.bf16 %v3112_v18, %v3108_v40  ;;  %3501 = vmatprep.mubr.bf16.mxu1 %v3235_v20 }
 0x6c4   : > { %3502 = vmatmul.mubr.bf16.gmra.mrb[68].mxu1 %v3234_v36 }
 0x6c5   : > { %3388 = vmatprep.mubr.bf16.mxu0 %v3233_v38 }
 0x6c6   : > { %3389 = vmatmul.mubr.bf16.gmra.mrb[68].mxu0 %v3232_v42 }
 0x77f   : > { %v4048_v30 = vpop.f32.mrb[56].mxu1 }
 0x780   : > { %v4049_v29 = vpop.f32.mrb[57].mxu1 }
 0x781   : > { %v4050_v46 = vadd.f32 %v4049_v29, %v4048_v30  ;;  %v4051_v26 = vpop.f32.mrb[58].mxu1  ;;  %v4008_v2 = vpop.f32.mrb[56].mxu0 }
 0x782   : > { %v4052_v28 = vpop.f32.mrb[59].mxu1  ;;  %v4009_v10 = vpop.f32.mrb[57].mxu0 }
 0x783   : > { %v3510_v53 = vmax.f32 %v4050_v46, 0.0  ;;  %v4053_v1 = vadd.f32 %v4052_v28, %v4051_v26  ;;  %v4010_v8 = vadd.f32 %v4009_v10, %v4008_v2  ;;  %v4011_v50 = vpop.f32.mrb[58].mxu0 }
 0x784   : > { %v4012_v51 = vpop.f32.mrb[59].mxu0 }
 0x785   : > { %v3879_v52 = vpack.c.bf16 %v3510_v53, %v3510_v53  ;;  %v3511_v6 = vmax.f32 %v4053_v1, 0.0  ;;  %v3397_v9 = vmax.f32 %v4010_v8, 0.0  ;;  %v4013_v23 = vadd.f32 %v4012_v51, %v4011_v50 }
 0x787   : > { %3550 = vst [vmem:[%s5875_s30 + $0x4] sm:$0xf] %v3879_v52  ;;  %v3880_v0 = vpack.c.bf16 %v3511_v6, %v3511_v6  ;;  %v3871_v25 = vpack.c.bf16 %v3397_v9, %v3397_v9  ;;  %v3398_v16 = vmax.f32 %v4013_v23, 0.0  ;;  %v4054_v17 = vpop.f32.mrb[60].mxu1 }
 0x788   : > { %v4055_v22 = vpop.f32.mrb[61].mxu1 }
 0x789   : > { %3551 = vst [vmem:[%s5875_s30 + $0xc] sm:$0xf] %v3880_v0  ;;  %3437 = vst [vmem:[%s5875_s30] sm:$0xf] %v3871_v25  ;;  %v3872_v34 = vpack.c.bf16 %v3398_v16, %v3398_v16  ;;  %v4056_v35 = vadd.f32 %v4055_v22, %v4054_v17  ;;  %v4057_v43 = vpop.f32.mrb[62].mxu1  ;;  %v4014_v44 = vpop.f32.mrb[60].mxu0 }
 0x78a   : > { %v4058_v54 = vpop.f32.mrb[63].mxu1  ;;  %v4015_v55 = vpop.f32.mrb[61].mxu0 }
 0x78b   : > { %3438 = vst [vmem:[%s5875_s30 + $0x8] sm:$0xf] %v3872_v34  ;;  %v3512_v32 = vmax.f32 %v4056_v35, 0.0  ;;  %v4059_v48 = vadd.f32 %v4058_v54, %v4057_v43  ;;  %v4016_v49 = vadd.f32 %v4015_v55, %v4014_v44  ;;  %v4017_v57 = vpop.f32.mrb[62].mxu0 }
 0x78c   : > { %v4018_v58 = vpop.f32.mrb[63].mxu0 }
 0x78d   : > { %v3881_v59 = vpack.c.bf16 %v3512_v32, %v3512_v32  ;;  %v3513_v60 = vmax.f32 %v4059_v48, 0.0  ;;  %v3399_v63 = vmax.f32 %v4016_v49, 0.0  ;;  %v4019_v39 = vadd.f32 %v4018_v58, %v4017_v57 }
 0x78f   : > { %3552 = vst [vmem:[%s5875_s30 + $0x14] sm:$0xf] %v3881_v59  ;;  %v3882_v14 = vpack.c.bf16 %v3513_v60, %v3513_v60  ;;  %v3873_v11 = vpack.c.bf16 %v3399_v63, %v3399_v63  ;;  %v3400_v3 = vmax.f32 %v4019_v39, 0.0  ;;  %v4060_v4 = vpop.f32.mrb[64].mxu1 }
 0x790   : > { %v4061_v21 = vpop.f32.mrb[65].mxu1 }
 0x791   : > { %3553 = vst [vmem:[%s5875_s30 + $0x1c] sm:$0xf] %v3882_v14  ;;  %3439 = vst [vmem:[%s5875_s30 + $0x10] sm:$0xf] %v3873_v11  ;;  %v3874_v5 = vpack.c.bf16 %v3400_v3, %v3400_v3  ;;  %v4062_v24 = vadd.f32 %v4061_v21, %v4060_v4  ;;  %v4063_v12 = vpop.f32.mrb[66].mxu1  ;;  %v4020_v31 = vpop.f32.mrb[64].mxu0 }
 0x792   : > { %v4064_v13 = vpop.f32.mrb[67].mxu1  ;;  %v4021_v27 = vpop.f32.mrb[65].mxu0 }
 0x793   : > { %3440 = vst [vmem:[%s5875_s30 + $0x18] sm:$0xf] %v3874_v5  ;;  %v3514_v7 = vmax.f32 %v4062_v24, 0.0  ;;  %v4065_v45 = vadd.f32 %v4064_v13, %v4063_v12  ;;  %v4022_v62 = vadd.f32 %v4021_v27, %v4020_v31  ;;  %v4023_v33 = vpop.f32.mrb[66].mxu0 }
 0x794   : > { %v4024_v19 = vpop.f32.mrb[67].mxu0 }
 0x795   : > { %v3883_v47 = vpack.c.bf16 %v3514_v7, %v3514_v7  ;;  %v3515_v56 = vmax.f32 %v4065_v45, 0.0  ;;  %v3401_v61 = vmax.f32 %v4022_v62, 0.0  ;;  %v4025_v15 = vadd.f32 %v4024_v19, %v4023_v33 }
 0x797   : > { %3554 = vst [vmem:[%s5875_s30 + $0x24] sm:$0xf] %v3883_v47  ;;  %v3884_v36 = vpack.c.bf16 %v3515_v56, %v3515_v56  ;;  %v3875_v37 = vpack.c.bf16 %v3401_v61, %v3401_v61  ;;  %v3402_v40 = vmax.f32 %v4025_v15, 0.0  ;;  %v4066_v20 = vpop.f32.mrb[68].mxu1 }
 0x798   : > { %v4067_v41 = vpop.f32.mrb[69].mxu1 }
 0x799   : > { %3555 = vst [vmem:[%s5875_s30 + $0x2c] sm:$0xf] %v3884_v36  ;;  %3441 = vst [vmem:[%s5875_s30 + $0x20] sm:$0xf] %v3875_v37  ;;  %v3876_v42 = vpack.c.bf16 %v3402_v40, %v3402_v40  ;;  %v4068_v18 = vadd.f32 %v4067_v41, %v4066_v20  ;;  %v4069_v38 = vpop.f32.mrb[70].mxu1  ;;  %v4026_v30 = vpop.f32.mrb[68].mxu0 }
 0x79a   : > { %v4070_v29 = vpop.f32.mrb[71].mxu1  ;;  %v4027_v46 = vpop.f32.mrb[69].mxu0 }
 0x79b   : > { %3442 = vst [vmem:[%s5875_s30 + $0x28] sm:$0xf] %v3876_v42  ;;  %v3516_v26 = vmax.f32 %v4068_v18, 0.0  ;;  %v4071_v2 = vadd.f32 %v4070_v29, %v4069_v38  ;;  %v4028_v28 = vadd.f32 %v4027_v46, %v4026_v30  ;;  %v4029_v10 = vpop.f32.mrb[70].mxu0 }
 0x79c   : > { %v4030_v53 = vpop.f32.mrb[71].mxu0 }
 0x79d   : > { %v3885_v1 = vpack.c.bf16 %v3516_v26, %v3516_v26  ;;  %v3517_v8 = vmax.f32 %v4071_v2, 0.0  ;;  %v3403_v50 = vmax.f32 %v4028_v28, 0.0  ;;  %v4031_v51 = vadd.f32 %v4030_v53, %v4029_v10 }
 0x79f   : > { %3556 = vst [vmem:[%s5875_s30 + $0x34] sm:$0xf] %v3885_v1  ;;  %v3886_v52 = vpack.c.bf16 %v3517_v8, %v3517_v8  ;;  %v3877_v6 = vpack.c.bf16 %v3403_v50, %v3403_v50  ;;  %v3404_v9 = vmax.f32 %v4031_v51, 0.0 }
 0x7a1   : > { %3557 = vst [vmem:[%s5875_s30 + $0x3c] sm:$0xf] %v3886_v52  ;;  %3443 = vst [vmem:[%s5875_s30 + $0x30] sm:$0xf] %v3877_v6  ;;  %v3878_v23 = vpack.c.bf16 %v3404_v9, %v3404_v9 }
 0x7a3   : > { %3444 = vst [vmem:[%s5875_s30 + $0x38] sm:$0xf] %v3878_v23 }
 0x7a4   : > { %4806 = shalt.err (!%p4803_p4)
}
 0x7a5   : > { %s4807_s23 = scalar_lea.hbm %s5895_s11, 1024  ;;  %s4811_s15 = scalar_lea.hbm %s5951_s7, 2048 }
 0x7a6   : > { %p4808_p9 = scmp.ne.s32.totalorder %s5895_s11, %s4807_s23  ;;  %p4812_p8 = scmp.lt.u32.totalorder %s5895_s11, %s5951_s7 }
 0x7a7   : > { %p4813_p13 = scmp.lt.u32.totalorder %s4811_s15, %s4807_s23  ;;  %p4815_p10 = scmp.lt.u32.totalorder %s4807_s23, %s5895_s11 }
 0x7a8   : > { %p4809_p0 = pnand %p4808_p9, %p5068_p5 }
 0x7a9   : > { %p4814_p6 = por %p4813_p13, %p4812_p8 }
 0x7aa   : > { %p4810_p11 = pneg %p4809_p0 }
 0x7ab   : > { %p4816_p3 = por %p4815_p10, %p4814_p6 }
 0x7ad   : > { %p4817_p7 = pnand %p4816_p3, %p4810_p11 }
 0x7af   : > { %4820 = shalt.err (!%p4817_p7)
}
 0x7b0   : > { %s4884_s8 = smov 128   ;;  %s4885_s29 = smov 8  }
 0x7b1   : > { %4486 = dma.vmem_to_hbm [thread:$0]  (%p5068_p5), %s5897_s9, 1024, %s5895_s11, %s3559_s28, %s4884_s8, %s4884_s8, %s4885_s29  }
 0x7b2 PF: > { %s5973_s17 = sld [smem:[#allocation16_spill]]  ;;  %s3587_s14 = sand.u32 1, %s4855_s24  }
 0x7b3   : > { %p5975_p2 = scmp.ge.s32.totalorder %s4867_s27, 2  ;;  %s3588_s21 = scalar_lea.sflag [#allocation5], %s3587_s14 }
 0x7b8   : > { %p5974_p12 = scmp.ne.s32.totalorder %s5973_s17, 0 }
 0x7ba   : > { %p4503_p1 = pnand %p5975_p2, %p5974_p12 }
 0x7bc   : > { %4850 = dma.done.wait (!%p4503_p1), %s3588_s21, 1024  }
 0x7bd   : > { %4852 = vsyncadd (!%p4503_p1), %s3588_s21, 4294966272  ;;  %p22_p4 = scmp.ge.s32.totalorder %s5036_s18, 4   ;;  %s5976_s24 = smov %s4859_s25 }
 0x7be   : > { %s5977_s25 = smov %s4863_s26  ;;  %s5978_s26 = smov %s5064_s12 }
 0x7bf   : > { %s5979_s27 = smov %s5036_s18  ;;  %24 = sbr.rel (!%p22_p4) target bundleno = 9 (0x9), region = 109 }
 0x7c6   :  { %3593 = vsyncpa [#allocation4], 1 }
 0x7c7   :  { %3595 = vsyncpa [#allocation4 + $0x1], 1 }
 0x7c8   :  { %3596 = vsyncpa [#allocation7], 1 }
 0x7c9   :  { %3597 = vsyncpa [#allocation10], 1 }
 0x7ca   :  { %3598 = vsyncpa [#allocation5], 1 }
 0x7cb   :  { %3600 = vsyncpa [#allocation5 + $0x1], 1 }

</bundles_post_ra>
